<compile_context>
chip_gen: v7x
topology: tpu7x:2x2x1
jax: 0.10.0
libtpu: 0.0.40
codegen_flags: <defaults>
</compile_context>

<pallas_src>
import jax
import jax.numpy as jnp
from jax.experimental import pallas as pl
from jax.experimental.pallas import tpu as pltpu


# ---------------------------------------------------------------------------
# Pallas kernel (one grid step = one sample)
# ---------------------------------------------------------------------------
def _enhance_warp_kernel(ab_ref, img_ref, msk_ref, src_ref, wgt_ref,
                         oimg_ref, omsk_ref):
    # ab_ref  : SMEM (B, 2)    f32   -- per-sample [a, b] intensity params
    # img_ref : VMEM (1, C, HW) f32  -- image channels of sample b
    # msk_ref : VMEM (1, 1, HW) f32  -- mask row of sample b
    # src_ref : VMEM (1, 4, HW) i32  -- bilinear tap source pixel ids (per dst pixel)
    # wgt_ref : VMEM (1, 4, HW) f32  -- bilinear tap weights (0 outside the border)
    # oimg_ref: VMEM (1, C, HW) u8   -- warped image
    # omsk_ref: VMEM (1, 1, HW) u8   -- warped mask
    b = pl.program_id(0)
    a = ab_ref[b, 0]
    off = ab_ref[b, 1]

    hw = img_ref.shape[-1]

    # Intensity transform on image rows only: np.uint8(np.clip(a*x+b, 0, 255))
    # == floor after clip (values are non-negative).  Mask passes through untouched.
    timg = jnp.floor(jnp.clip(img_ref[0] * a + off, 0.0, 255.0))
    tmsk = msk_ref[0]

    # Build the transposed (flip ∘ warpAffine) bilinear matrix wT[s, d] in VMEM
    # from the compact 4-tap description: wT[s, d] = sum_c wgt[c, d]*(src[c, d]==s).
    src = src_ref[0]                                   # (4, HW) int32
    wgt = wgt_ref[0]                                   # (4, HW) f32
    s_ids = jax.lax.broadcasted_iota(jnp.int32, (hw, hw), 0)   # row = src pixel id
    wT = jnp.zeros((hw, hw), jnp.float32)
    for c in range(4):
        wT = wT + jnp.where(s_ids == src[c:c + 1, :], wgt[c:c + 1, :], 0.0)
    wT = wT.astype(jnp.bfloat16)

    def warp_round(t):
        # bf16 MXU matmul with f32 accumulation; this dot is weight-push bound,
        # its FLOP cost is negligible at this size.
        o = jnp.dot(t.astype(jnp.bfloat16), wT,
                    preferred_element_type=jnp.float32)
        # cv2-style saturate + round (values >= 0 so floor(x+0.5) is round-half-up),
        # then narrow to uint8 via int32 (well-supported fptosi + truncation path).
        o = jnp.clip(jnp.floor(o + 0.5), 0.0, 255.0)
        return o.astype(jnp.int32).astype(jnp.uint8)

    oimg_ref[0] = warp_round(timg)
    omsk_ref[0] = warp_round(tmsk)


def _enhance_warp_call(ab, img_flat, msk_flat, src, wgt):
    B, C, HW = img_flat.shape
    return pl.pallas_call(
        _enhance_warp_kernel,
        grid=(B,),
        out_shape=(jax.ShapeDtypeStruct((B, C, HW), jnp.uint8),
                   jax.ShapeDtypeStruct((B, 1, HW), jnp.uint8)),
        in_specs=[
            pl.BlockSpec(memory_space=pltpu.MemorySpace.SMEM),      # (B, 2) [a, b]
            pl.BlockSpec((1, C, HW), lambda b: (b, 0, 0)),          # image channels
            pl.BlockSpec((1, 1, HW), lambda b: (b, 0, 0)),          # mask row
            pl.BlockSpec((1, 4, HW), lambda b: (b, 0, 0)),          # tap src ids
            pl.BlockSpec((1, 4, HW), lambda b: (b, 0, 0)),          # tap weights
        ],
        out_specs=(pl.BlockSpec((1, C, HW), lambda b: (b, 0, 0)),
                   pl.BlockSpec((1, 1, HW), lambda b: (b, 0, 0))),
        compiler_params=pltpu.CompilerParams(
            dimension_semantics=("parallel",)),
    )(ab, img_flat, msk_flat, src, wgt)


# ---------------------------------------------------------------------------
# Host-side (vectorized, scatter-free) construction of per-sample bilinear taps
# ---------------------------------------------------------------------------
def build_warp_taps(H, W, angle_deg, scale, do_flip, flip_code):
    """Per-sample 4-tap bilinear description of cv2.warpAffine(getRotationMatrix2D(
    ((rows-1)/2,(cols-1)/2), angle, scale), INTER_LINEAR, BORDER_CONSTANT=0)
    followed by cv2.flip(code) (applied only where do_flip).  Mirrors the original
    module's center argument order literally (exact for square images).

    angle_deg, scale: (B,) f32;  do_flip: (B,) bool;  flip_code: (B,) int32.
    Returns src (B, 4, HW) int32, wgt (B, 4, HW) f32 with
      out_flat[d] = sum_c wgt[c, d] * in_flat[src[c, d]].
    """
    cx = (H - 1) / 2.0
    cy = (W - 1) / 2.0
    theta = jnp.deg2rad(angle_deg.astype(jnp.float32))
    scale = scale.astype(jnp.float32)
    alpha = scale * jnp.cos(theta)
    beta = scale * jnp.sin(theta)
    tx = (1.0 - alpha) * cx - beta * cy
    ty = beta * cx + (1.0 - alpha) * cy
    # analytic inverse of A = [[alpha, beta], [-beta, alpha]]
    det = alpha * alpha + beta * beta
    inv00 = alpha / det
    inv01 = -beta / det
    inv10 = beta / det
    inv11 = alpha / det
    tinv_x = -(inv00 * tx + inv01 * ty)
    tinv_y = -(inv10 * tx + inv11 * ty)

    ys, xs = jnp.meshgrid(jnp.arange(H), jnp.arange(W), indexing="ij")
    ys = ys.reshape(-1).astype(jnp.float32)            # (HW,)
    xs = xs.reshape(-1).astype(jnp.float32)

    # cv2.flip is applied AFTER the warp: out[y, x] = warped[fy, fx]  (traced flags)
    do_flip = do_flip[:, None]
    code = flip_code[:, None]
    flip_y = do_flip & ((code == 0) | (code == -1))
    flip_x = do_flip & ((code == 1) | (code == -1))
    fy = jnp.where(flip_y, (H - 1) - ys[None, :], ys[None, :])     # (B, HW)
    fx = jnp.where(flip_x, (W - 1) - xs[None, :], xs[None, :])

    sx = inv00[:, None] * fx + inv01[:, None] * fy + tinv_x[:, None]
    sy = inv10[:, None] * fx + inv11[:, None] * fy + tinv_y[:, None]

    x0 = jnp.floor(sx)
    y0 = jnp.floor(sy)
    dx = sx - x0
    dy = sy - y0

    src_list, wgt_list = [], []
    for oy, ox in ((0, 0), (0, 1), (1, 0), (1, 1)):
        wy = dy if oy else (1.0 - dy)
        wx = dx if ox else (1.0 - dx)
        yc = y0 + oy
        xc = x0 + ox
        valid = (yc >= 0) & (yc <= H - 1) & (xc >= 0) & (xc <= W - 1)
        sidx = (jnp.clip(yc, 0, H - 1).astype(jnp.int32) * W
                + jnp.clip(xc, 0, W - 1).astype(jnp.int32))
        src_list.append(sidx)
        wgt_list.append(jnp.where(valid, wy * wx, 0.0))
    src = jnp.stack(src_list, axis=1).astype(jnp.int32)            # (B, 4, HW)
    wgt = jnp.stack(wgt_list, axis=1).astype(jnp.float32)          # (B, 4, HW)
    return src, wgt


@jax.jit
def data_enhance_forward(images, masks, a, b, angle_deg, scale, do_flip, flip_code):
    """images: (B, C, H, W) f32 in [0, 255];  masks: (B, H, W) f32 label map.
    Per-sample params a, b, angle_deg, scale, do_flip, flip_code: shape (B,), all traced."""
    B, C, H, W = images.shape
    HW = H * W
    src, wgt = build_warp_taps(H, W, angle_deg, scale, do_flip, flip_code)

    img_flat = images.reshape(B, C, HW).astype(jnp.float32)
    msk_flat = masks.reshape(B, 1, HW).astype(jnp.float32)
    ab = jnp.stack([a.astype(jnp.float32), b.astype(jnp.float32)], axis=-1)   # (B, 2)

    img_out, msk_out = _enhance_warp_call(ab, img_flat, msk_flat, src, wgt)
    return img_out.reshape(B, C, H, W), msk_out.reshape(B, H, W)


# ---------------------------------------------------------------------------
if __name__ == "__main__":
    B, C, H, W = 4, 3, 16, 16
    degrees = [-15.0, 15.0]
    scale_rng = [0.9, 1.1]

    key = jax.random.PRNGKey(0)
    k_img, k1, k2, k3, k4, k5, k6 = jax.random.split(key, 7)

    images = (jax.random.uniform(k_img, (B, C, H, W)) * 255.0).astype(jnp.float32)
    # synthetic label masks with values in {0,1,2} (lumen/media-style)
    yy, xx = jnp.meshgrid(jnp.arange(H), jnp.arange(W), indexing="ij")
    r2 = (yy - (H - 1) / 2.0) ** 2 + (xx - (W - 1) / 2.0) ** 2
    mask1 = jnp.where(r2 < 9.0, 2.0, jnp.where(r2 < 36.0, 1.0, 0.0)).astype(jnp.float32)
    masks = jnp.tile(mask1[None], (B, 1, 1))

    # deterministic per-sample stand-ins for the Python `random` draws in forward()
    a = jax.random.randint(k1, (B,), 6, 15).astype(jnp.float32) / 10.0       # randint(6,14)/10
    b = jax.random.randint(k2, (B,), 0, 4).astype(jnp.float32) * 10.0 - 20.0  # randrange(0,40,10)-20
    angle = jax.random.uniform(k3, (B,)) * (degrees[1] - degrees[0]) + degrees[0]
    scale = jax.random.uniform(k4, (B,)) * (scale_rng[1] - scale_rng[0]) + scale_rng[0]
    do_flip = jax.random.uniform(k5, (B,)) < 0.5
    flip_code = jax.random.randint(k6, (B,), 0, 3) - 1

    img_out, mask_out = data_enhance_forward(
        images, masks, a, b, angle, scale, do_flip, flip_code)
    jax.block_until_ready((img_out, mask_out))

    assert img_out.shape == (B, C, H, W) and img_out.dtype == jnp.uint8
    assert mask_out.shape == (B, H, W) and mask_out.dtype == jnp.uint8
    # TODO(synk): Bdry2RadialArcCords(mask, 16, 32) (lumen_sig/media_sig outputs)
    # is host-side OpenCV contour geometry and is intentionally not implemented.
    print("KERNEL_OK")
</pallas_src>

<mosaic_0001>
module attributes {stable_mosaic.version = 11 : i64} {
  func.func @_enhance_warp_kernel(%arg0: i32, %arg1: memref<4x2xf32, #tpu.memory_space<smem>>, %arg2: memref<1x3x256xf32, #tpu.memory_space<vmem>>, %arg3: memref<1x1x256xf32, #tpu.memory_space<vmem>>, %arg4: memref<1x4x256xi32, #tpu.memory_space<vmem>>, %arg5: memref<1x4x256xf32, #tpu.memory_space<vmem>>, %arg6: memref<1x3x256xi8, #tpu.memory_space<vmem>>, %arg7: memref<1x1x256xi8, #tpu.memory_space<vmem>>) attributes {dimension_semantics = [#tpu.dimension_semantics<parallel>], iteration_bounds = array<i64: 4>, scalar_prefetch = 0 : i64, scratch_operands = 0 : i64, tpu.core_type = #tpu.core_type<tc>, window_params = [{transform_indices = @transform_0, window_bounds = array<i64: 4, 2>}, {transform_indices = @transform_1, window_bounds = array<i64: 1, 3, 256>}, {transform_indices = @transform_2, window_bounds = array<i64: 1, 1, 256>}, {transform_indices = @transform_3, window_bounds = array<i64: 1, 4, 256>}, {transform_indices = @transform_4, window_bounds = array<i64: 1, 4, 256>}, {transform_indices = @transform_5, window_bounds = array<i64: 1, 3, 256>}, {transform_indices = @transform_6, window_bounds = array<i64: 1, 1, 256>}]} {
    %0 = arith.index_cast %arg0 : i32 to index
    %c0 = arith.constant 0 : index
    %1 = memref.load %arg1[%0, %c0] : memref<4x2xf32, #tpu.memory_space<smem>>
    %2 = arith.index_cast %arg0 : i32 to index
    %c1 = arith.constant 1 : index
    %3 = memref.load %arg1[%2, %c1] : memref<4x2xf32, #tpu.memory_space<smem>>
    %c0_0 = arith.constant 0 : index
    %c0_1 = arith.constant 0 : index
    %c0_2 = arith.constant 0 : index
    %4 = vector.load %arg2[%c0_0, %c0_1, %c0_2] : memref<1x3x256xf32, #tpu.memory_space<vmem>>, vector<1x3x256xf32>
    %5 = vector.shape_cast %4 : vector<1x3x256xf32> to vector<3x256xf32>
    %6 = vector.broadcast %1 : f32 to vector<3x256xf32>
    %7 = arith.mulf %5, %6 : vector<3x256xf32>
    %8 = vector.broadcast %3 : f32 to vector<3x256xf32>
    %9 = arith.addf %7, %8 : vector<3x256xf32>
    %cst = arith.constant 0.000000e+00 : f32
    %cst_3 = arith.constant 2.550000e+02 : f32
    %10 = vector.broadcast %cst : f32 to vector<3x256xf32>
    %11 = arith.maximumf %10, %9 : vector<3x256xf32>
    %12 = vector.broadcast %cst_3 : f32 to vector<3x256xf32>
    %13 = arith.minimumf %12, %11 : vector<3x256xf32>
    %14 = math.floor %13 : vector<3x256xf32>
    %c0_4 = arith.constant 0 : index
    %c0_5 = arith.constant 0 : index
    %c0_6 = arith.constant 0 : index
    %15 = vector.load %arg3[%c0_4, %c0_5, %c0_6] : memref<1x1x256xf32, #tpu.memory_space<vmem>>, vector<1x1x256xf32>
    %16 = vector.shape_cast %15 : vector<1x1x256xf32> to vector<1x256xf32>
    %c0_7 = arith.constant 0 : index
    %c0_8 = arith.constant 0 : index
    %c0_9 = arith.constant 0 : index
    %17 = vector.load %arg4[%c0_7, %c0_8, %c0_9] : memref<1x4x256xi32, #tpu.memory_space<vmem>>, vector<1x4x256xi32>
    %18 = vector.shape_cast %17 : vector<1x4x256xi32> to vector<4x256xi32>
    %c0_10 = arith.constant 0 : index
    %c0_11 = arith.constant 0 : index
    %c0_12 = arith.constant 0 : index
    %19 = vector.load %arg5[%c0_10, %c0_11, %c0_12] : memref<1x4x256xf32, #tpu.memory_space<vmem>>, vector<1x4x256xf32>
    %20 = vector.shape_cast %19 : vector<1x4x256xf32> to vector<4x256xf32>
    %21 = tpu.iota {dimensions = array<i32: 0>} : vector<256x256xi32>
    %cst_13 = arith.constant 0.000000e+00 : f32
    %22 = vector.broadcast %cst_13 : f32 to vector<256x256xf32>
    %23 = vector.extract_strided_slice %18 {offsets = [0, 0], sizes = [1, 256], strides = [1, 1]} : vector<4x256xi32> to vector<1x256xi32>
    %24 = vector.broadcast %23 : vector<1x256xi32> to vector<256x256xi32>
    %25 = arith.cmpi eq, %21, %24 : vector<256x256xi32>
    %26 = vector.extract_strided_slice %20 {offsets = [0, 0], sizes = [1, 256], strides = [1, 1]} : vector<4x256xf32> to vector<1x256xf32>
    %cst_14 = arith.constant 0.000000e+00 : f32
    %27 = vector.shape_cast %26 : vector<1x256xf32> to vector<1x256xf32>
    %28 = vector.broadcast %27 : vector<1x256xf32> to vector<256x256xf32>
    %29 = vector.broadcast %cst_14 : f32 to vector<256x256xf32>
    %30 = arith.select %25, %28, %29 : vector<256x256xi1>, vector<256x256xf32>
    %31 = arith.addf %22, %30 : vector<256x256xf32>
    %32 = vector.extract_strided_slice %18 {offsets = [1, 0], sizes = [1, 256], strides = [1, 1]} : vector<4x256xi32> to vector<1x256xi32>
    %33 = vector.broadcast %32 : vector<1x256xi32> to vector<256x256xi32>
    %34 = arith.cmpi eq, %21, %33 : vector<256x256xi32>
    %35 = vector.extract_strided_slice %20 {offsets = [1, 0], sizes = [1, 256], strides = [1, 1]} : vector<4x256xf32> to vector<1x256xf32>
    %cst_15 = arith.constant 0.000000e+00 : f32
    %36 = vector.shape_cast %35 : vector<1x256xf32> to vector<1x256xf32>
    %37 = vector.broadcast %36 : vector<1x256xf32> to vector<256x256xf32>
    %38 = vector.broadcast %cst_15 : f32 to vector<256x256xf32>
    %39 = arith.select %34, %37, %38 : vector<256x256xi1>, vector<256x256xf32>
    %40 = arith.addf %31, %39 : vector<256x256xf32>
    %41 = vector.extract_strided_slice %18 {offsets = [2, 0], sizes = [1, 256], strides = [1, 1]} : vector<4x256xi32> to vector<1x256xi32>
    %42 = vector.broadcast %41 : vector<1x256xi32> to vector<256x256xi32>
    %43 = arith.cmpi eq, %21, %42 : vector<256x256xi32>
    %44 = vector.extract_strided_slice %20 {offsets = [2, 0], sizes = [1, 256], strides = [1, 1]} : vector<4x256xf32> to vector<1x256xf32>
    %cst_16 = arith.constant 0.000000e+00 : f32
    %45 = vector.shape_cast %44 : vector<1x256xf32> to vector<1x256xf32>
    %46 = vector.broadcast %45 : vector<1x256xf32> to vector<256x256xf32>
    %47 = vector.broadcast %cst_16 : f32 to vector<256x256xf32>
    %48 = arith.select %43, %46, %47 : vector<256x256xi1>, vector<256x256xf32>
    %49 = arith.addf %40, %48 : vector<256x256xf32>
    %50 = vector.extract_strided_slice %18 {offsets = [3, 0], sizes = [1, 256], strides = [1, 1]} : vector<4x256xi32> to vector<1x256xi32>
    %51 = vector.broadcast %50 : vector<1x256xi32> to vector<256x256xi32>
    %52 = arith.cmpi eq, %21, %51 : vector<256x256xi32>
    %53 = vector.extract_strided_slice %20 {offsets = [3, 0], sizes = [1, 256], strides = [1, 1]} : vector<4x256xf32> to vector<1x256xf32>
    %cst_17 = arith.constant 0.000000e+00 : f32
    %54 = vector.shape_cast %53 : vector<1x256xf32> to vector<1x256xf32>
    %55 = vector.broadcast %54 : vector<1x256xf32> to vector<256x256xf32>
    %56 = vector.broadcast %cst_17 : f32 to vector<256x256xf32>
    %57 = arith.select %52, %55, %56 : vector<256x256xi1>, vector<256x256xf32>
    %58 = arith.addf %49, %57 : vector<256x256xf32>
    %59 = arith.truncf %58 : vector<256x256xf32> to vector<256x256xbf16>
    %60 = arith.truncf %14 : vector<3x256xf32> to vector<3x256xbf16>
    %cst_18 = arith.constant dense<0.000000e+00> : vector<3x256xf32>
    %61 = tpu.matmul %60, %59, %cst_18 {dimension_numbers = #tpu.dot_dimension_numbers<[1], [0], [0], [1], [0, 0, 1, 1], [], []>} : vector<3x256xbf16>, vector<256x256xbf16>, vector<3x256xf32> -> vector<3x256xf32>
    %cst_19 = arith.constant 5.000000e-01 : f32
    %62 = vector.broadcast %cst_19 : f32 to vector<3x256xf32>
    %63 = arith.addf %61, %62 : vector<3x256xf32>
    %64 = math.floor %63 : vector<3x256xf32>
    %cst_20 = arith.constant 0.000000e+00 : f32
    %cst_21 = arith.constant 2.550000e+02 : f32
    %65 = vector.broadcast %cst_20 : f32 to vector<3x256xf32>
    %66 = arith.maximumf %65, %64 : vector<3x256xf32>
    %67 = vector.broadcast %cst_21 : f32 to vector<3x256xf32>
    %68 = arith.minimumf %67, %66 : vector<3x256xf32>
    %69 = arith.fptosi %68 : vector<3x256xf32> to vector<3x256xi32>
    %70 = arith.trunci %69 : vector<3x256xi32> to vector<3x256xi8>
    %c0_22 = arith.constant 0 : index
    %c0_23 = arith.constant 0 : index
    %c0_24 = arith.constant 0 : index
    %71 = vector.load %arg6[%c0_22, %c0_23, %c0_24] : memref<1x3x256xi8, #tpu.memory_space<vmem>>, vector<1x3x256xi8>
    %72 = vector.shape_cast %71 : vector<1x3x256xi8> to vector<3x256xi8>
    %73 = vector.shape_cast %70 : vector<3x256xi8> to vector<1x3x256xi8>
    tpu.vector_store %arg6[%c0_22, %c0_23, %c0_24], %73 {strides = array<i32>} : memref<1x3x256xi8, #tpu.memory_space<vmem>>, vector<1x3x256xi8>,
    %74 = arith.truncf %16 : vector<1x256xf32> to vector<1x256xbf16>
    %cst_25 = arith.constant dense<0.000000e+00> : vector<1x256xf32>
    %75 = tpu.matmul %74, %59, %cst_25 {dimension_numbers = #tpu.dot_dimension_numbers<[1], [0], [0], [1], [0, 0, 1, 1], [], []>} : vector<1x256xbf16>, vector<256x256xbf16>, vector<1x256xf32> -> vector<1x256xf32>
    %cst_26 = arith.constant 5.000000e-01 : f32
    %76 = vector.broadcast %cst_26 : f32 to vector<1x256xf32>
    %77 = arith.addf %75, %76 : vector<1x256xf32>
    %78 = math.floor %77 : vector<1x256xf32>
    %cst_27 = arith.constant 0.000000e+00 : f32
    %cst_28 = arith.constant 2.550000e+02 : f32
    %79 = vector.broadcast %cst_27 : f32 to vector<1x256xf32>
    %80 = arith.maximumf %79, %78 : vector<1x256xf32>
    %81 = vector.broadcast %cst_28 : f32 to vector<1x256xf32>
    %82 = arith.minimumf %81, %80 : vector<1x256xf32>
    %83 = arith.fptosi %82 : vector<1x256xf32> to vector<1x256xi32>
    %84 = arith.trunci %83 : vector<1x256xi32> to vector<1x256xi8>
    %c0_29 = arith.constant 0 : index
    %c0_30 = arith.constant 0 : index
    %c0_31 = arith.constant 0 : index
    %85 = vector.load %arg7[%c0_29, %c0_30, %c0_31] : memref<1x1x256xi8, #tpu.memory_space<vmem>>, vector<1x1x256xi8>
    %86 = vector.shape_cast %85 : vector<1x1x256xi8> to vector<1x256xi8>
    %87 = vector.shape_cast %84 : vector<1x256xi8> to vector<1x1x256xi8>
    tpu.vector_store %arg7[%c0_29, %c0_30, %c0_31], %87 {strides = array<i32>} : memref<1x1x256xi8, #tpu.memory_space<vmem>>, vector<1x1x256xi8>,
    return
  }
  func.func @transform_0(%arg0: i32) -> (i32, i32) {
    %c0_i32 = arith.constant 0 : i32
    %c0_i32_0 = arith.constant 0 : i32
    %c0_i32_1 = arith.constant 0 : i32
    return %c0_i32, %c0_i32_0 : i32, i32
  }
  func.func @transform_1(%arg0: i32) -> (i32, i32, i32) {
    %c0_i32 = arith.constant 0 : i32
    %c0_i32_0 = arith.constant 0 : i32
    %c0_i32_1 = arith.constant 0 : i32
    return %arg0, %c0_i32, %c0_i32_0 : i32, i32, i32
  }
  func.func @transform_2(%arg0: i32) -> (i32, i32, i32) {
    %c0_i32 = arith.constant 0 : i32
    %c0_i32_0 = arith.constant 0 : i32
    %c0_i32_1 = arith.constant 0 : i32
    return %arg0, %c0_i32, %c0_i32_0 : i32, i32, i32
  }
  func.func @transform_3(%arg0: i32) -> (i32, i32, i32) {
    %c0_i32 = arith.constant 0 : i32
    %c0_i32_0 = arith.constant 0 : i32
    %c0_i32_1 = arith.constant 0 : i32
    return %arg0, %c0_i32, %c0_i32_0 : i32, i32, i32
  }
  func.func @transform_4(%arg0: i32) -> (i32, i32, i32) {
    %c0_i32 = arith.constant 0 : i32
    %c0_i32_0 = arith.constant 0 : i32
    %c0_i32_1 = arith.constant 0 : i32
    return %arg0, %c0_i32, %c0_i32_0 : i32, i32, i32
  }
  func.func @transform_5(%arg0: i32) -> (i32, i32, i32) {
    %c0_i32 = arith.constant 0 : i32
    %c0_i32_0 = arith.constant 0 : i32
    %c0_i32_1 = arith.constant 0 : i32
    return %arg0, %c0_i32, %c0_i32_0 : i32, i32, i32
  }
  func.func @transform_6(%arg0: i32) -> (i32, i32, i32) {
    %c0_i32 = arith.constant 0 : i32
    %c0_i32_0 = arith.constant 0 : i32
    %c0_i32_1 = arith.constant 0 : i32
    return %arg0, %c0_i32, %c0_i32_0 : i32, i32, i32
  }
}

</mosaic_0001>

<bundles_post_ra>
// kernel: data_enhance_forward.1
= control target key start
LH: loop header
LB: loop body
LE: loop exit
PB: predicated region body
PF: predicated region fallthrough
CT: control target
= control target key end

     0   :  { %12 = vsyncpa [#allocation3], 0  ;;  %s1737_s21 = smov 0   ;;  %s2639_s0 = inlined_call_operand.vmem [shape: f32[4,2], index: 0, kind: input, shape index: {}]   ;;  %s2640_s1 = inlined_call_operand.vmem [shape: f32[4,3,256], index: 1, kind: input, shape index: {}]   ;;  %s2641_s2 = inlined_call_operand.vmem [shape: f32[4,1,256], index: 2, kind: input, shape index: {}]   ;;  %s2642_s3 = inlined_call_operand.vmem [shape: s32[4,4,256], index: 3, kind: input, shape index: {}]   ;;  %s2643_s4 = inlined_call_operand.vmem [shape: f32[4,4,256], index: 4, kind: input, shape index: {}]   ;;  %s2644_s5 = inlined_call_operand.vmem [shape: u8[4,3,256], index: 5, kind: output, shape index: {0}]   ;;  %s2645_s6 = inlined_call_operand.vmem [shape: u8[4,1,256], index: 6, kind: output, shape index: {1}]  }
   0x1 LB: > { %s1743_s22 = sadd.s32 4294967295, %s1698_s21   ;;  %p1623_p0 = scmp.ge.s32.totalorder %s1698_s21, 1  ;;  %s1698_s21 = sphi %s1737_s21, %s18_s21  }
   0x2   : > { %p200_p1 = scmp.lt.s32.totalorder %s1698_s21, 5  ;;  %s213_s25 = sshll.u32 %s2639_s0, 4  ;;  %s214_s25 = int_to_ptr.vmem [resolvable:$true] %s213_s25 }
   0x3   : > { %p1661_p3 = scmp.eq.s32.totalorder %s1743_s22, 0  ;;  %s1673_s27 = scalar_lea.vmem %s214_s25, 64 }
   0x4   : > { %p1750_p2 = pnand %p1623_p0, %p200_p1  ;;  %p1674_p6 = scmp.ne.s32.totalorder %s214_s25, %s1673_s27 }
   0x5   : > { %p1681_p10 = scmp.lt.s32.totalorder %s214_s25, %s214_s25  ;;  %p1682_p11 = scmp.lt.s32.totalorder %s1673_s27, %s1673_s27 }
   0x6   : > { %p1657_p4 = pneg %p1750_p2 }
   0x7   : > { %p1683_p12 = por %p1682_p11, %p1681_p10 }
   0x8   : > { %p1658_p5 = pnand %p1661_p3, %p1657_p4 }
   0xa   : > { %p1675_p7 = pneg %p1658_p5 }
   0xc   : > { %p1676_p8 = pnand %p1675_p7, %p1674_p6 }
   0xe   : > { %p1677_p9 = pneg %p1676_p8 }
  0x10   : > { %p1684_p13 = pnand %p1683_p12, %p1677_p9 }
  0x12   : > { %1687 = shalt.err (!%p1684_p13)
}
  0x13   : > { %s1700_s28 = smov [#allocation2]   ;;  %257 = sbr.rel (%p1750_p2) target bundleno = 484 (0x1e4), region = 40 }
  0x14   : > { %1660 = dma.vmem_to_smem (!%p1658_p5), %s214_s25, 64, %s1700_s28, [#allocation3]  }
  0x1a   : > { %1693 = dma.done.wait (%p1661_p3), [#allocation3], 64  }
  0x1b   : > { %1695 = vsyncadd (%p1661_p3), [#allocation3], 4294967232 }
  0x1c   : > { %263 = sfence }
  0x1d   : > { %p305_p0 = scmp.lt.s32.totalorder %s1743_s22, 3  ;;  %v347_v0 = vlaneseq  ;;  %s1637_s13 = sshll.u32 %s1743_s22, 7 }
  0x1e   : > { %s334_s14 = sadd.s32 1, %s1637_s13  ;;  %s2541_s15 = sld [smem:[#allocation2 + %s1637_s13]] }
  0x1f   : > { %s1767_s29 = scalar_select %p305_p0, %s1743_s22, 3  ;;  %v1769_v1 = vshrl.u32 %v347_v0, 7 }
  0x20   : > { %s2543_s16 = sld [smem:[#allocation2 + %s334_s14]] }
  0x21   : > { %s1772_s30 = sshll.u32 %s1767_s29, 3  ;;  %v1775_v2 = vadd.s32 8, %v1769_v1  ;;  %v1778_v3 = vsub.s32 0, %v1769_v1  ;;  %v386_v4 = vsub.s32 4, %v1769_v1  ;;  %v1782_v5 = vsub.s32 1, %v1769_v1  ;;  %s2584_s17 = sshll.u32 %s1767_s29, 1 }
  0x22   : > { %s318_s9 = scalar_lea.vmem %s2642_s3, %s1772_s30  ;;  %s323_s12 = scalar_lea.vmem %s2643_s4, %s1772_s30  ;;  %v613_v6 = vsub.s32 5, %v1769_v1  ;;  %v835_v7 = vsub.s32 2, %v1769_v1  ;;  %v839_v8 = vsub.s32 6, %v1769_v1  ;;  %v1796_v9 = vsub.s32 3, %v1769_v1 }
  0x23   : > { %v1798_v10 = vld [vmem:[%s318_s9] sm:$0xff]  ;;  %v1065_v12 = vsub.s32 7, %v1769_v1  ;;  %v1804_v13 = vadd.s32 16, %v1769_v1  ;;  %v1807_v14 = vadd.s32 24, %v1769_v1  ;;  %v1810_v15 = vadd.s32 32, %v1769_v1  ;;  %s309_s20 = scalar_lea.vmem %s2640_s1, %s1772_s30  ;;  %s313_s24 = scalar_lea.vmem %s2641_s2, %s2584_s17 }
  0x24   : > { %v1800_v11 = vld [vmem:[%s323_s12] sm:$0xff]  ;;  %v387_v16 = vrot.slane %v1798_v10, %v386_v4  ;;  %v614_v18 = vrot.slane %v1798_v10, %v613_v6  ;;  %v840_v20 = vrot.slane %v1798_v10, %v839_v8  ;;  %v383_v44 = vrot.slane %v1798_v10, %v1778_v3  ;;  %s331_s27 = scalar_lea.vmem %s2645_s6, %s2584_s17  ;;  %s327_s30 = scalar_lea.vmem %s2644_s5, %s2584_s17 }
  0x25   : > { %v468_v17 = vrot.slane %v1800_v11, %v386_v4  ;;  %v694_v19 = vrot.slane %v1800_v11, %v613_v6  ;;  %v920_v21 = vrot.slane %v1800_v11, %v839_v8  ;;  %v1066_v22 = vrot.slane %v1798_v10, %v1065_v12 }
  0x26   : > { %v1146_v23 = vrot.slane %v1800_v11, %v1065_v12  ;;  %v1821_v24 = vrot.slane %v387_v16, %v1778_v3  ;;  %v1827_v26 = vrot.slane %v614_v18, %v1782_v5  ;;  %v1832_v28 = vrot.slane %v840_v20, %v835_v7 }
  0x27   : > { %v1824_v25 = vrot.slane %v468_v17, %v1778_v3  ;;  %v1830_v27 = vrot.slane %v694_v19, %v1782_v5  ;;  %v1834_v29 = vrot.slane %v920_v21, %v835_v7  ;;  %v1837_v30 = vrot.slane %v1066_v22, %v1796_v9 }
  0x28   : > { %v1840_v31 = vrot.slane %v1146_v23, %v1796_v9  ;;  %vm397_vm0 = vcmp.eq.s32.totalorder %v1769_v1, %v1821_v24  ;;  %vm399_vm1 = vcmp.eq.s32.totalorder %v1775_v2, %v1821_v24  ;;  %vm624_vm2 = vcmp.eq.s32.totalorder %v1769_v1, %v1827_v26 }
  0x29   : > { %vm626_vm3 = vcmp.eq.s32.totalorder %v1775_v2, %v1827_v26  ;;  %v480_v32 = vsel %vm397_vm0, %v1824_v25, 0.0  ;;  %v482_v33 = vsel %vm399_vm1, %v1824_v25, 0.0  ;;  %v706_v34 = vsel %vm624_vm2, %v1830_v27, 0.0 }
  0x2a   : > { %v708_v35 = vsel %vm626_vm3, %v1830_v27, 0.0  ;;  %v770_v36 = vadd.f32 %v706_v34, %v480_v32  ;;  %vm850_vm4 = vcmp.eq.s32.totalorder %v1769_v1, %v1832_v28  ;;  %vm852_vm5 = vcmp.eq.s32.totalorder %v1775_v2, %v1832_v28 }
  0x2b   : > { %v772_v37 = vadd.f32 %v708_v35, %v482_v33  ;;  %v932_v38 = vsel %vm850_vm4, %v1834_v29, 0.0  ;;  %v934_v39 = vsel %vm852_vm5, %v1834_v29, 0.0  ;;  %vm1076_vm6 = vcmp.eq.s32.totalorder %v1769_v1, %v1837_v30 }
  0x2c   : > { %vm1078_vm7 = vcmp.eq.s32.totalorder %v1775_v2, %v1837_v30  ;;  %v996_v40 = vadd.f32 %v932_v38, %v770_v36  ;;  %v1158_v42 = vsel %vm1076_vm6, %v1840_v31, 0.0  ;;  %v464_v45 = vrot.slane %v1800_v11, %v1778_v3 }
  0x2d   : > { %v998_v41 = vadd.f32 %v934_v39, %v772_v37  ;;  %v1160_v43 = vsel %vm1078_vm7, %v1840_v31, 0.0  ;;  %v610_v46 = vrot.slane %v1798_v10, %v1782_v5  ;;  %v690_v47 = vrot.slane %v1800_v11, %v1782_v5 }
  0x2e   : > { %v1222_v48 = vadd.f32 %v1158_v42, %v996_v40  ;;  %v836_v50 = vrot.slane %v1798_v10, %v835_v7  ;;  %v916_v51 = vrot.slane %v1800_v11, %v835_v7  ;;  %v1877_v52 = vrot.slane %v383_v44, %v1778_v3 }
  0x2f   : > { %v1224_v49 = vadd.f32 %v1160_v43, %v998_v41  ;;  %v1880_v53 = vrot.slane %v464_v45, %v1778_v3  ;;  %v1883_v54 = vrot.slane %v610_v46, %v1782_v5  ;;  %v1886_v55 = vrot.slane %v690_v47, %v1782_v5 }
  0x30   : > { %v1888_v57 = vrot.slane %v836_v50, %v835_v7  ;;  %v1890_v58 = vrot.slane %v916_v51, %v835_v7  ;;  %v1062_v59 = vrot.slane %v1798_v10, %v1796_v9  ;;  %vm396_vm8 = vcmp.eq.s32.totalorder %v1769_v1, %v1877_v52 }
  0x31   : > { %v1286_v56 = vpack.c.bf16 %v1224_v49, %v1222_v48  ;;  %vm398_vm9 = vcmp.eq.s32.totalorder %v1775_v2, %v1877_v52  ;;  %vm623_vm10 = vcmp.eq.s32.totalorder %v1769_v1, %v1883_v54  ;;  %vm625_vm11 = vcmp.eq.s32.totalorder %v1775_v2, %v1883_v54 }
  0x32   : > { %v479_v60 = vsel %vm396_vm8, %v1880_v53, 0.0  ;;  %v481_v61 = vsel %vm398_vm9, %v1880_v53, 0.0  ;;  %v705_v62 = vsel %vm623_vm10, %v1886_v55, 0.0  ;;  %v707_v63 = vsel %vm625_vm11, %v1886_v55, 0.0 }
  0x33   : > { %1322 = vmatprep.subr.bf16.mxu0 %v1286_v56  ;;  %1413 = vmatprep.subr.bf16.mxu1 %v1286_v56  ;;  %v769_v0 = vadd.f32 %v705_v62, %v479_v60  ;;  %v771_v4 = vadd.f32 %v707_v63, %v481_v61  ;;  %vm849_vm12 = vcmp.eq.s32.totalorder %v1769_v1, %v1888_v57 }
  0x34   : > { %vm851_vm13 = vcmp.eq.s32.totalorder %v1775_v2, %v1888_v57  ;;  %v931_v6 = vsel %vm849_vm12, %v1890_v58, 0.0  ;;  %v1913_v8 = vrot.slane %v1062_v59, %v1796_v9  ;;  %v1142_v10 = vrot.slane %v1800_v11, %v1796_v9 }
  0x35   : > { %v933_v7 = vsel %vm851_vm13, %v1890_v58, 0.0  ;;  %v995_v12 = vadd.f32 %v931_v6, %v769_v0  ;;  %vm401_vm14 = vcmp.eq.s32.totalorder %v1804_v13, %v1821_v24  ;;  %vm403_vm15 = vcmp.eq.s32.totalorder %v1807_v14, %v1821_v24 }
  0x36   : > { %v997_v16 = vadd.f32 %v933_v7, %v771_v4  ;;  %vm1075_vm0 = vcmp.eq.s32.totalorder %v1769_v1, %v1913_v8  ;;  %vm1077_vm1 = vcmp.eq.s32.totalorder %v1775_v2, %v1913_v8  ;;  %v1926_v17 = vrot.slane %v1142_v10, %v1796_v9 }
  0x37   : > { %v484_v18 = vsel %vm401_vm14, %v1824_v25, 0.0  ;;  %v486_v11 = vsel %vm403_vm15, %v1824_v25, 0.0  ;;  %vm628_vm2 = vcmp.eq.s32.totalorder %v1804_v13, %v1827_v26  ;;  %vm630_vm3 = vcmp.eq.s32.totalorder %v1807_v14, %v1827_v26 }
  0x38   : > { %vm854_vm4 = vcmp.eq.s32.totalorder %v1804_v13, %v1832_v28  ;;  %v1157_v19 = vsel %vm1075_vm0, %v1926_v17, 0.0  ;;  %v1159_v2 = vsel %vm1077_vm1, %v1926_v17, 0.0  ;;  %v710_v9 = vsel %vm628_vm2, %v1830_v27, 0.0 }
  0x39   : > { %v712_v20 = vsel %vm630_vm3, %v1830_v27, 0.0  ;;  %v1221_v21 = vadd.f32 %v1157_v19, %v995_v12  ;;  %v1223_v22 = vadd.f32 %v1159_v2, %v997_v16  ;;  %v774_v23 = vadd.f32 %v710_v9, %v484_v18 }
  0x3a   : > { %v776_v32 = vadd.f32 %v712_v20, %v486_v11  ;;  %vm856_vm5 = vcmp.eq.s32.totalorder %v1807_v14, %v1832_v28  ;;  %v936_v33 = vsel %vm854_vm4, %v1834_v29, 0.0  ;;  %vm1080_vm6 = vcmp.eq.s32.totalorder %v1804_v13, %v1837_v30 }
  0x3b   : > { %vm1082_vm7 = vcmp.eq.s32.totalorder %v1807_v14, %v1837_v30  ;;  %v1285_v34 = vpack.c.bf16 %v1223_v22, %v1221_v21  ;;  %v938_v35 = vsel %vm856_vm5, %v1834_v29, 0.0  ;;  %v1000_v36 = vadd.f32 %v936_v33, %v774_v23 }
  0x3c   : > { %v1162_v37 = vsel %vm1080_vm6, %v1840_v31, 0.0  ;;  %v1002_v38 = vadd.f32 %v938_v35, %v776_v32  ;;  %v1164_v39 = vsel %vm1082_vm7, %v1840_v31, 0.0  ;;  %vm400_vm8 = vcmp.eq.s32.totalorder %v1804_v13, %v1877_v52 }
  0x3d   : > { %vm402_vm9 = vcmp.eq.s32.totalorder %v1807_v14, %v1877_v52  ;;  %1323 = vmatpush1.bf16.msra.mxu0 %v1285_v34  ;;  %1414 = vmatpush1.bf16.msra.mxu1 %v1285_v34  ;;  %v1226_v40 = vadd.f32 %v1162_v37, %v1000_v36  ;;  %v483_v41 = vsel %vm400_vm8, %v1880_v53, 0.0  ;;  %vm627_vm10 = vcmp.eq.s32.totalorder %v1804_v13, %v1883_v54 }
  0x3e   : > { %v485_v42 = vsel %vm402_vm9, %v1880_v53, 0.0  ;;  %v1228_v43 = vadd.f32 %v1164_v39, %v1002_v38  ;;  %vm629_vm11 = vcmp.eq.s32.totalorder %v1807_v14, %v1883_v54  ;;  %v709_v44 = vsel %vm627_vm10, %v1886_v55, 0.0 }
  0x3f   : > { %vm853_vm12 = vcmp.eq.s32.totalorder %v1804_v13, %v1888_v57  ;;  %v711_v45 = vsel %vm629_vm11, %v1886_v55, 0.0  ;;  %v773_v46 = vadd.f32 %v709_v44, %v483_v41  ;;  %vm855_vm13 = vcmp.eq.s32.totalorder %v1807_v14, %v1888_v57 }
  0x40   : > { %v935_v47 = vsel %vm853_vm12, %v1890_v58, 0.0  ;;  %v1288_v48 = vpack.c.bf16 %v1228_v43, %v1226_v40  ;;  %v775_v49 = vadd.f32 %v711_v45, %v485_v42  ;;  %v937_v50 = vsel %vm855_vm13, %v1890_v58, 0.0 }
  0x41   : > { %vm1079_vm14 = vcmp.eq.s32.totalorder %v1804_v13, %v1913_v8  ;;  %v999_v51 = vadd.f32 %v935_v47, %v773_v46  ;;  %vm1081_vm15 = vcmp.eq.s32.totalorder %v1807_v14, %v1913_v8  ;;  %v353_v59 = vadd.s32 40, %v1769_v1 }
  0x42   : > { %v1161_v56 = vsel %vm1079_vm14, %v1926_v17, 0.0  ;;  %1324 = vmatprep.subr.bf16.mxu0 %v1288_v48  ;;  %1415 = vmatprep.subr.bf16.mxu1 %v1288_v48  ;;  %v1001_v60 = vadd.f32 %v937_v50, %v775_v49  ;;  %v1163_v61 = vsel %vm1081_vm15, %v1926_v17, 0.0  ;;  %vm405_vm0 = vcmp.eq.s32.totalorder %v1810_v15, %v1821_v24 }
  0x43   : > { %vm632_vm1 = vcmp.eq.s32.totalorder %v1810_v15, %v1827_v26  ;;  %v1225_v13 = vadd.f32 %v1161_v56, %v999_v51  ;;  %vm407_vm2 = vcmp.eq.s32.totalorder %v353_v59, %v1821_v24  ;;  %v488_v14 = vsel %vm405_vm0, %v1824_v25, 0.0 }
  0x44   : > { %vm634_vm3 = vcmp.eq.s32.totalorder %v353_v59, %v1827_v26  ;;  %v1227_v62 = vadd.f32 %v1163_v61, %v1001_v60  ;;  %v490_v63 = vsel %vm407_vm2, %v1824_v25, 0.0  ;;  %v714_v0 = vsel %vm632_vm1, %v1830_v27, 0.0 }
  0x45   : > { %v716_v4 = vsel %vm634_vm3, %v1830_v27, 0.0  ;;  %v778_v6 = vadd.f32 %v714_v0, %v488_v14  ;;  %vm858_vm4 = vcmp.eq.s32.totalorder %v1810_v15, %v1832_v28  ;;  %vm860_vm5 = vcmp.eq.s32.totalorder %v353_v59, %v1832_v28 }
  0x46   : > { %v780_v7 = vadd.f32 %v716_v4, %v490_v63  ;;  %v1287_v10 = vpack.c.bf16 %v1227_v62, %v1225_v13  ;;  %v940_v12 = vsel %vm858_vm4, %v1834_v29, 0.0  ;;  %v942_v16 = vsel %vm860_vm5, %v1834_v29, 0.0 }
  0x47   : > { %vm1084_vm6 = vcmp.eq.s32.totalorder %v1810_v15, %v1837_v30  ;;  %v1004_v18 = vadd.f32 %v940_v12, %v778_v6  ;;  %vm1086_vm7 = vcmp.eq.s32.totalorder %v353_v59, %v1837_v30  ;;  %vm404_vm8 = vcmp.eq.s32.totalorder %v1810_v15, %v1877_v52 }
  0x48   : > { %v1006_v11 = vadd.f32 %v942_v16, %v780_v7  ;;  %v1166_v19 = vsel %vm1084_vm6, %v1840_v31, 0.0  ;;  %1325 = vmatpush1.bf16.msra.mxu0 %v1287_v10  ;;  %1416 = vmatpush1.bf16.msra.mxu1 %v1287_v10  ;;  %v1168_v2 = vsel %vm1086_vm7, %v1840_v31, 0.0  ;;  %vm406_vm9 = vcmp.eq.s32.totalorder %v353_v59, %v1877_v52 }
  0x49   : > { %vm631_vm10 = vcmp.eq.s32.totalorder %v1810_v15, %v1883_v54  ;;  %v1230_v9 = vadd.f32 %v1166_v19, %v1004_v18  ;;  %v487_v21 = vsel %vm404_vm8, %v1880_v53, 0.0  ;;  %v489_v22 = vsel %vm406_vm9, %v1880_v53, 0.0 }
  0x4a   : > { %v1232_v20 = vadd.f32 %v1168_v2, %v1006_v11  ;;  %vm633_vm11 = vcmp.eq.s32.totalorder %v353_v59, %v1883_v54  ;;  %v713_v23 = vsel %vm631_vm10, %v1886_v55, 0.0  ;;  %vm857_vm12 = vcmp.eq.s32.totalorder %v1810_v15, %v1888_v57 }
  0x4b   : > { %vm859_vm13 = vcmp.eq.s32.totalorder %v353_v59, %v1888_v57  ;;  %v715_v33 = vsel %vm633_vm11, %v1886_v55, 0.0  ;;  %v777_v34 = vadd.f32 %v713_v23, %v487_v21  ;;  %v939_v35 = vsel %vm857_vm12, %v1890_v58, 0.0 }
  0x4c   : > { %v1290_v32 = vpack.c.bf16 %v1232_v20, %v1230_v9  ;;  %v779_v36 = vadd.f32 %v715_v33, %v489_v22  ;;  %v941_v37 = vsel %vm859_vm13, %v1890_v58, 0.0  ;;  %vm1083_vm14 = vcmp.eq.s32.totalorder %v1810_v15, %v1913_v8 }
  0x4d   : > { %vm1085_vm15 = vcmp.eq.s32.totalorder %v353_v59, %v1913_v8  ;;  %v1003_v38 = vadd.f32 %v939_v35, %v777_v34  ;;  %v1165_v39 = vsel %vm1083_vm14, %v1926_v17, 0.0  ;;  %v354_v41 = vadd.s32 48, %v1769_v1 }
  0x4e   : > { %1326 = vmatprep.subr.bf16.mxu0 %v1290_v32  ;;  %1417 = vmatprep.subr.bf16.mxu1 %v1290_v32  ;;  %v1167_v40 = vsel %vm1085_vm15, %v1926_v17, 0.0  ;;  %v1005_v42 = vadd.f32 %v941_v37, %v779_v36  ;;  %v355_v43 = vadd.s32 56, %v1769_v1  ;;  %v2018_v44 = vadd.s32 64, %v1769_v1 }
  0x4f   : > { %v2021_v45 = vadd.s32 72, %v1769_v1  ;;  %v1229_v15 = vadd.f32 %v1165_v39, %v1003_v38  ;;  %vm409_vm0 = vcmp.eq.s32.totalorder %v354_v41, %v1821_v24  ;;  %vm636_vm1 = vcmp.eq.s32.totalorder %v354_v41, %v1827_v26 }
  0x50   : > { %vm862_vm2 = vcmp.eq.s32.totalorder %v354_v41, %v1832_v28  ;;  %v1231_v46 = vadd.f32 %v1167_v40, %v1005_v42  ;;  %vm411_vm3 = vcmp.eq.s32.totalorder %v355_v43, %v1821_v24  ;;  %v492_v47 = vsel %vm409_vm0, %v1824_v25, 0.0 }
  0x51   : > { %vm638_vm4 = vcmp.eq.s32.totalorder %v355_v43, %v1827_v26  ;;  %v494_v48 = vsel %vm411_vm3, %v1824_v25, 0.0  ;;  %v718_v49 = vsel %vm636_vm1, %v1830_v27, 0.0  ;;  %vm864_vm5 = vcmp.eq.s32.totalorder %v355_v43, %v1832_v28 }
  0x52   : > { %v720_v50 = vsel %vm638_vm4, %v1830_v27, 0.0  ;;  %v1289_v51 = vpack.c.bf16 %v1231_v46, %v1229_v15  ;;  %v782_v56 = vadd.f32 %v718_v49, %v492_v47  ;;  %v944_v60 = vsel %vm862_vm2, %v1834_v29, 0.0 }
  0x53   : > { %v784_v59 = vadd.f32 %v720_v50, %v494_v48  ;;  %v946_v61 = vsel %vm864_vm5, %v1834_v29, 0.0  ;;  %vm1088_vm6 = vcmp.eq.s32.totalorder %v354_v41, %v1837_v30  ;;  %vm1090_vm7 = vcmp.eq.s32.totalorder %v355_v43, %v1837_v30 }
  0x54   : > { %vm408_vm8 = vcmp.eq.s32.totalorder %v354_v41, %v1877_v52  ;;  %1327 = vmatpush1.bf16.msra.mxu0 %v1289_v51  ;;  %1418 = vmatpush1.bf16.msra.mxu1 %v1289_v51  ;;  %v1008_v13 = vadd.f32 %v944_v60, %v782_v56  ;;  %v1170_v62 = vsel %vm1088_vm6, %v1840_v31, 0.0  ;;  %v1172_v63 = vsel %vm1090_vm7, %v1840_v31, 0.0 }
  0x55   : > { %v1010_v14 = vadd.f32 %v946_v61, %v784_v59  ;;  %vm410_vm9 = vcmp.eq.s32.totalorder %v355_v43, %v1877_v52  ;;  %v491_v0 = vsel %vm408_vm8, %v1880_v53, 0.0  ;;  %vm635_vm10 = vcmp.eq.s32.totalorder %v354_v41, %v1883_v54 }
  0x56   : > { %vm637_vm11 = vcmp.eq.s32.totalorder %v355_v43, %v1883_v54  ;;  %v1234_v4 = vadd.f32 %v1170_v62, %v1008_v13  ;;  %v493_v7 = vsel %vm410_vm9, %v1880_v53, 0.0  ;;  %v717_v10 = vsel %vm635_vm10, %v1886_v55, 0.0 }
  0x57   : > { %v1236_v6 = vadd.f32 %v1172_v63, %v1010_v14  ;;  %v719_v12 = vsel %vm637_vm11, %v1886_v55, 0.0  ;;  %v781_v16 = vadd.f32 %v717_v10, %v491_v0  ;;  %vm861_vm12 = vcmp.eq.s32.totalorder %v354_v41, %v1888_v57 }
  0x58   : > { %vm863_vm13 = vcmp.eq.s32.totalorder %v355_v43, %v1888_v57  ;;  %v783_v11 = vadd.f32 %v719_v12, %v493_v7  ;;  %v943_v19 = vsel %vm861_vm12, %v1890_v58, 0.0  ;;  %vm1087_vm14 = vcmp.eq.s32.totalorder %v354_v41, %v1913_v8 }
  0x59   : > { %v1292_v18 = vpack.c.bf16 %v1236_v6, %v1234_v4  ;;  %v945_v2 = vsel %vm863_vm13, %v1890_v58, 0.0  ;;  %v1007_v9 = vadd.f32 %v943_v19, %v781_v16  ;;  %vm1089_vm15 = vcmp.eq.s32.totalorder %v355_v43, %v1913_v8 }
  0x5a   : > { %vm413_vm0 = vcmp.eq.s32.totalorder %v2018_v44, %v1821_v24  ;;  %v1009_v20 = vadd.f32 %v945_v2, %v783_v11  ;;  %v1169_v21 = vsel %vm1087_vm14, %v1926_v17, 0.0  ;;  %v1171_v22 = vsel %vm1089_vm15, %v1926_v17, 0.0 }
  0x5b   : > { %1328 = vmatprep.subr.bf16.mxu0 %v1292_v18  ;;  %1419 = vmatprep.subr.bf16.mxu1 %v1292_v18  ;;  %vm415_vm1 = vcmp.eq.s32.totalorder %v2021_v45, %v1821_v24  ;;  %v1233_v23 = vadd.f32 %v1169_v21, %v1007_v9  ;;  %v496_v32 = vsel %vm413_vm0, %v1824_v25, 0.0  ;;  %vm640_vm2 = vcmp.eq.s32.totalorder %v2018_v44, %v1827_v26 }
  0x5c   : > { %v498_v33 = vsel %vm415_vm1, %v1824_v25, 0.0  ;;  %v1235_v34 = vadd.f32 %v1171_v22, %v1009_v20  ;;  %vm642_vm3 = vcmp.eq.s32.totalorder %v2021_v45, %v1827_v26  ;;  %v722_v35 = vsel %vm640_vm2, %v1830_v27, 0.0 }
  0x5d   : > { %vm866_vm4 = vcmp.eq.s32.totalorder %v2018_v44, %v1832_v28  ;;  %v724_v36 = vsel %vm642_vm3, %v1830_v27, 0.0  ;;  %v786_v37 = vadd.f32 %v722_v35, %v496_v32  ;;  %vm868_vm5 = vcmp.eq.s32.totalorder %v2021_v45, %v1832_v28 }
  0x5e   : > { %v948_v38 = vsel %vm866_vm4, %v1834_v29, 0.0  ;;  %v1291_v39 = vpack.c.bf16 %v1235_v34, %v1233_v23  ;;  %v788_v40 = vadd.f32 %v724_v36, %v498_v33  ;;  %v950_v41 = vsel %vm868_vm5, %v1834_v29, 0.0 }
  0x5f   : > { %vm1092_vm6 = vcmp.eq.s32.totalorder %v2018_v44, %v1837_v30  ;;  %v1012_v42 = vadd.f32 %v948_v38, %v786_v37  ;;  %vm1094_vm7 = vcmp.eq.s32.totalorder %v2021_v45, %v1837_v30  ;;  %vm412_vm8 = vcmp.eq.s32.totalorder %v2018_v44, %v1877_v52 }
  0x60   : > { %v1174_v43 = vsel %vm1092_vm6, %v1840_v31, 0.0  ;;  %1329 = vmatpush1.bf16.msra.mxu0 %v1291_v39  ;;  %1420 = vmatpush1.bf16.msra.mxu1 %v1291_v39  ;;  %v1014_v15 = vadd.f32 %v950_v41, %v788_v40  ;;  %v1176_v46 = vsel %vm1094_vm7, %v1840_v31, 0.0  ;;  %vm414_vm9 = vcmp.eq.s32.totalorder %v2021_v45, %v1877_v52 }
  0x61   : > { %v495_v47 = vsel %vm412_vm8, %v1880_v53, 0.0  ;;  %v1238_v48 = vadd.f32 %v1174_v43, %v1012_v42  ;;  %v497_v49 = vsel %vm414_vm9, %v1880_v53, 0.0  ;;  %vm639_vm10 = vcmp.eq.s32.totalorder %v2018_v44, %v1883_v54 }
  0x62   : > { %vm641_vm11 = vcmp.eq.s32.totalorder %v2021_v45, %v1883_v54  ;;  %v1240_v50 = vadd.f32 %v1176_v46, %v1014_v15  ;;  %v721_v51 = vsel %vm639_vm10, %v1886_v55, 0.0  ;;  %vm865_vm12 = vcmp.eq.s32.totalorder %v2018_v44, %v1888_v57 }
  0x63   : > { %v723_v56 = vsel %vm641_vm11, %v1886_v55, 0.0  ;;  %v785_v59 = vadd.f32 %v721_v51, %v495_v47  ;;  %vm867_vm13 = vcmp.eq.s32.totalorder %v2021_v45, %v1888_v57  ;;  %v947_v61 = vsel %vm865_vm12, %v1890_v58, 0.0 }
  0x64   : > { %v787_v60 = vadd.f32 %v723_v56, %v497_v49  ;;  %v1294_v13 = vpack.c.bf16 %v1240_v50, %v1238_v48  ;;  %v949_v14 = vsel %vm867_vm13, %v1890_v58, 0.0  ;;  %vm1091_vm14 = vcmp.eq.s32.totalorder %v2018_v44, %v1913_v8 }
  0x65   : > { %vm1093_vm15 = vcmp.eq.s32.totalorder %v2021_v45, %v1913_v8  ;;  %v1011_v62 = vadd.f32 %v947_v61, %v785_v59  ;;  %v1173_v0 = vsel %vm1091_vm14, %v1926_v17, 0.0  ;;  %v358_v6 = vadd.s32 80, %v1769_v1 }
  0x66   : > { %v1013_v63 = vadd.f32 %v949_v14, %v787_v60  ;;  %v1175_v4 = vsel %vm1093_vm15, %v1926_v17, 0.0  ;;  %1330 = vmatprep.subr.bf16.mxu0 %v1294_v13  ;;  %1421 = vmatprep.subr.bf16.mxu1 %v1294_v13  ;;  %v359_v7 = vadd.s32 88, %v1769_v1  ;;  %v2106_v10 = vadd.s32 96, %v1769_v1 }
  0x67   : > { %v2109_v44 = vadd.s32 104, %v1769_v1  ;;  %v1237_v12 = vadd.f32 %v1173_v0, %v1011_v62  ;;  %v2112_v16 = vadd.s32 112, %v1769_v1  ;;  %v2115_v18 = vadd.s32 120, %v1769_v1 }
  0x68   : > { %v1239_v45 = vadd.f32 %v1175_v4, %v1013_v63  ;;  %vm417_vm0 = vcmp.eq.s32.totalorder %v358_v6, %v1821_v24  ;;  %vm419_vm1 = vcmp.eq.s32.totalorder %v359_v7, %v1821_v24  ;;  %vm644_vm2 = vcmp.eq.s32.totalorder %v358_v6, %v1827_v26 }
  0x69   : > { %vm646_vm3 = vcmp.eq.s32.totalorder %v359_v7, %v1827_v26  ;;  %v500_v19 = vsel %vm417_vm0, %v1824_v25, 0.0  ;;  %v502_v2 = vsel %vm419_vm1, %v1824_v25, 0.0  ;;  %v726_v9 = vsel %vm644_vm2, %v1830_v27, 0.0 }
  0x6a   : > { %v1293_v11 = vpack.c.bf16 %v1239_v45, %v1237_v12  ;;  %v728_v20 = vsel %vm646_vm3, %v1830_v27, 0.0  ;;  %v790_v21 = vadd.f32 %v726_v9, %v500_v19  ;;  %vm870_vm4 = vcmp.eq.s32.totalorder %v358_v6, %v1832_v28 }
  0x6b   : > { %vm872_vm5 = vcmp.eq.s32.totalorder %v359_v7, %v1832_v28  ;;  %v792_v22 = vadd.f32 %v728_v20, %v502_v2  ;;  %v952_v23 = vsel %vm870_vm4, %v1834_v29, 0.0  ;;  %vm1096_vm6 = vcmp.eq.s32.totalorder %v358_v6, %v1837_v30 }
  0x6c   : > { %1331 = vmatpush1.bf16.msra.mxu0 %v1293_v11  ;;  %1422 = vmatpush1.bf16.msra.mxu1 %v1293_v11  ;;  %v954_v32 = vsel %vm872_vm5, %v1834_v29, 0.0  ;;  %v1016_v33 = vadd.f32 %v952_v23, %v790_v21  ;;  %vm1098_vm7 = vcmp.eq.s32.totalorder %v359_v7, %v1837_v30  ;;  %v1178_v34 = vsel %vm1096_vm6, %v1840_v31, 0.0 }
  0x6d   : > { %vm416_vm8 = vcmp.eq.s32.totalorder %v358_v6, %v1877_v52  ;;  %v1018_v35 = vadd.f32 %v954_v32, %v792_v22  ;;  %v1180_v36 = vsel %vm1098_vm7, %v1840_v31, 0.0  ;;  %vm418_vm9 = vcmp.eq.s32.totalorder %v359_v7, %v1877_v52 }
  0x6e   : > { %v499_v37 = vsel %vm416_vm8, %v1880_v53, 0.0  ;;  %v1242_v38 = vadd.f32 %v1178_v34, %v1016_v33  ;;  %v501_v39 = vsel %vm418_vm9, %v1880_v53, 0.0  ;;  %vm643_vm10 = vcmp.eq.s32.totalorder %v358_v6, %v1883_v54 }
  0x6f   : > { %vm645_vm11 = vcmp.eq.s32.totalorder %v359_v7, %v1883_v54  ;;  %v1244_v40 = vadd.f32 %v1180_v36, %v1018_v35  ;;  %v725_v41 = vsel %vm643_vm10, %v1886_v55, 0.0  ;;  %vm869_vm12 = vcmp.eq.s32.totalorder %v358_v6, %v1888_v57 }
  0x70   : > { %v727_v42 = vsel %vm645_vm11, %v1886_v55, 0.0  ;;  %v789_v43 = vadd.f32 %v725_v41, %v499_v37  ;;  %vm871_vm13 = vcmp.eq.s32.totalorder %v359_v7, %v1888_v57  ;;  %v951_v46 = vsel %vm869_vm12, %v1890_v58, 0.0 }
  0x71   : > { %v791_v15 = vadd.f32 %v727_v42, %v501_v39  ;;  %v1296_v47 = vpack.c.bf16 %v1244_v40, %v1242_v38  ;;  %v953_v48 = vsel %vm871_vm13, %v1890_v58, 0.0  ;;  %vm1095_vm14 = vcmp.eq.s32.totalorder %v358_v6, %v1913_v8 }
  0x72   : > { %vm1097_vm15 = vcmp.eq.s32.totalorder %v359_v7, %v1913_v8  ;;  %v1015_v49 = vadd.f32 %v951_v46, %v789_v43  ;;  %v1177_v51 = vsel %vm1095_vm14, %v1926_v17, 0.0  ;;  %vm421_vm0 = vcmp.eq.s32.totalorder %v2106_v10, %v1821_v24 }
  0x73   : > { %v1017_v50 = vadd.f32 %v953_v48, %v791_v15  ;;  %v1179_v56 = vsel %vm1097_vm15, %v1926_v17, 0.0  ;;  %1332 = vmatprep.subr.bf16.mxu0 %v1296_v47  ;;  %1423 = vmatprep.subr.bf16.mxu1 %v1296_v47  ;;  %vm423_vm1 = vcmp.eq.s32.totalorder %v2109_v44, %v1821_v24  ;;  %vm648_vm2 = vcmp.eq.s32.totalorder %v2106_v10, %v1827_v26 }
  0x74   : > { %v2156_v59 = vadd.s32 128, %v1769_v1  ;;  %v1241_v60 = vadd.f32 %v1177_v51, %v1015_v49  ;;  %v504_v13 = vsel %vm421_vm0, %v1824_v25, 0.0  ;;  %v506_v14 = vsel %vm423_vm1, %v1824_v25, 0.0 }
  0x75   : > { %v1243_v61 = vadd.f32 %v1179_v56, %v1017_v50  ;;  %vm650_vm3 = vcmp.eq.s32.totalorder %v2109_v44, %v1827_v26  ;;  %v730_v62 = vsel %vm648_vm2, %v1830_v27, 0.0  ;;  %vm874_vm4 = vcmp.eq.s32.totalorder %v2106_v10, %v1832_v28 }
  0x76   : > { %vm876_vm5 = vcmp.eq.s32.totalorder %v2109_v44, %v1832_v28  ;;  %v732_v0 = vsel %vm650_vm3, %v1830_v27, 0.0  ;;  %v794_v4 = vadd.f32 %v730_v62, %v504_v13  ;;  %v956_v6 = vsel %vm874_vm4, %v1834_v29, 0.0 }
  0x77   : > { %v1295_v63 = vpack.c.bf16 %v1243_v61, %v1241_v60  ;;  %v796_v7 = vadd.f32 %v732_v0, %v506_v14  ;;  %v958_v12 = vsel %vm876_vm5, %v1834_v29, 0.0  ;;  %vm1100_vm6 = vcmp.eq.s32.totalorder %v2106_v10, %v1837_v30 }
  0x78   : > { %vm1102_vm7 = vcmp.eq.s32.totalorder %v2109_v44, %v1837_v30  ;;  %v1020_v45 = vadd.f32 %v956_v6, %v794_v4  ;;  %v1182_v11 = vsel %vm1100_vm6, %v1840_v31, 0.0  ;;  %vm420_vm8 = vcmp.eq.s32.totalorder %v2106_v10, %v1877_v52 }
  0x79   : > { %1333 = vmatpush1.bf16.msra.mxu0 %v1295_v63  ;;  %1424 = vmatpush1.bf16.msra.mxu1 %v1295_v63  ;;  %v1184_v19 = vsel %vm1102_vm7, %v1840_v31, 0.0  ;;  %v1022_v2 = vadd.f32 %v958_v12, %v796_v7  ;;  %vm422_vm9 = vcmp.eq.s32.totalorder %v2109_v44, %v1877_v52  ;;  %v503_v9 = vsel %vm420_vm8, %v1880_v53, 0.0 }
  0x7a   : > { %vm647_vm10 = vcmp.eq.s32.totalorder %v2106_v10, %v1883_v54  ;;  %v1246_v20 = vadd.f32 %v1182_v11, %v1020_v45  ;;  %v505_v21 = vsel %vm422_vm9, %v1880_v53, 0.0  ;;  %vm649_vm11 = vcmp.eq.s32.totalorder %v2109_v44, %v1883_v54 }
  0x7b   : > { %v729_v22 = vsel %vm647_vm10, %v1886_v55, 0.0  ;;  %v1248_v23 = vadd.f32 %v1184_v19, %v1022_v2  ;;  %v731_v32 = vsel %vm649_vm11, %v1886_v55, 0.0  ;;  %vm873_vm12 = vcmp.eq.s32.totalorder %v2106_v10, %v1888_v57 }
  0x7c   : > { %v793_v33 = vadd.f32 %v729_v22, %v503_v9  ;;  %v795_v34 = vadd.f32 %v731_v32, %v505_v21  ;;  %vm875_vm13 = vcmp.eq.s32.totalorder %v2109_v44, %v1888_v57  ;;  %v955_v35 = vsel %vm873_vm12, %v1890_v58, 0.0 }
  0x7d   : > { %vm1099_vm14 = vcmp.eq.s32.totalorder %v2106_v10, %v1913_v8  ;;  %v1298_v36 = vpack.c.bf16 %v1248_v23, %v1246_v20  ;;  %v957_v37 = vsel %vm875_vm13, %v1890_v58, 0.0  ;;  %vm1101_vm15 = vcmp.eq.s32.totalorder %v2109_v44, %v1913_v8 }
  0x7e   : > { %v1019_v38 = vadd.f32 %v955_v35, %v793_v33  ;;  %v1021_v39 = vadd.f32 %v957_v37, %v795_v34  ;;  %v1181_v40 = vsel %vm1099_vm14, %v1926_v17, 0.0  ;;  %v1183_v41 = vsel %vm1101_vm15, %v1926_v17, 0.0 }
  0x7f   : > { %vm425_vm0 = vcmp.eq.s32.totalorder %v2112_v16, %v1821_v24  ;;  %1334 = vmatprep.subr.bf16.mxu0 %v1298_v36  ;;  %1425 = vmatprep.subr.bf16.mxu1 %v1298_v36  ;;  %vm427_vm1 = vcmp.eq.s32.totalorder %v2115_v18, %v1821_v24  ;;  %vm652_vm2 = vcmp.eq.s32.totalorder %v2112_v16, %v1827_v26  ;;  %v365_v20 = vadd.s32 136, %v1769_v1 }
  0x80   : > { %v1245_v42 = vadd.f32 %v1181_v40, %v1019_v38  ;;  %v508_v10 = vsel %vm425_vm0, %v1824_v25, 0.0  ;;  %v1247_v44 = vadd.f32 %v1183_v41, %v1021_v39  ;;  %v510_v43 = vsel %vm427_vm1, %v1824_v25, 0.0 }
  0x81   : > { %vm654_vm3 = vcmp.eq.s32.totalorder %v2115_v18, %v1827_v26  ;;  %v734_v15 = vsel %vm652_vm2, %v1830_v27, 0.0  ;;  %vm878_vm4 = vcmp.eq.s32.totalorder %v2112_v16, %v1832_v28  ;;  %vm880_vm5 = vcmp.eq.s32.totalorder %v2115_v18, %v1832_v28 }
  0x82   : > { %v736_v46 = vsel %vm654_vm3, %v1830_v27, 0.0  ;;  %v798_v47 = vadd.f32 %v734_v15, %v508_v10  ;;  %v1297_v48 = vpack.c.bf16 %v1247_v44, %v1245_v42  ;;  %v960_v50 = vsel %vm878_vm4, %v1834_v29, 0.0 }
  0x83   : > { %v800_v49 = vadd.f32 %v736_v46, %v510_v43  ;;  %v962_v51 = vsel %vm880_vm5, %v1834_v29, 0.0  ;;  %vm1104_vm6 = vcmp.eq.s32.totalorder %v2112_v16, %v1837_v30  ;;  %vm1106_vm7 = vcmp.eq.s32.totalorder %v2115_v18, %v1837_v30 }
  0x84   : > { %v1024_v56 = vadd.f32 %v960_v50, %v798_v47  ;;  %vm424_vm8 = vcmp.eq.s32.totalorder %v2112_v16, %v1877_v52  ;;  %1335 = vmatpush1.bf16.msra.mxu0 %v1297_v48  ;;  %1426 = vmatpush1.bf16.msra.mxu1 %v1297_v48  ;;  %v1186_v61 = vsel %vm1104_vm6, %v1840_v31, 0.0  ;;  %v1188_v13 = vsel %vm1106_vm7, %v1840_v31, 0.0 }
  0x85   : > { %v1026_v60 = vadd.f32 %v962_v51, %v800_v49  ;;  %vm426_vm9 = vcmp.eq.s32.totalorder %v2115_v18, %v1877_v52  ;;  %v507_v62 = vsel %vm424_vm8, %v1880_v53, 0.0  ;;  %vm651_vm10 = vcmp.eq.s32.totalorder %v2112_v16, %v1883_v54 }
  0x86   : > { %v1250_v14 = vadd.f32 %v1186_v61, %v1024_v56  ;;  %v509_v63 = vsel %vm426_vm9, %v1880_v53, 0.0  ;;  %vm653_vm11 = vcmp.eq.s32.totalorder %v2115_v18, %v1883_v54  ;;  %v733_v4 = vsel %vm651_vm10, %v1886_v55, 0.0 }
  0x87   : > { %v1252_v0 = vadd.f32 %v1188_v13, %v1026_v60  ;;  %vm877_vm12 = vcmp.eq.s32.totalorder %v2112_v16, %v1888_v57  ;;  %v735_v6 = vsel %vm653_vm11, %v1886_v55, 0.0  ;;  %v797_v7 = vadd.f32 %v733_v4, %v507_v62 }
  0x88   : > { %vm879_vm13 = vcmp.eq.s32.totalorder %v2115_v18, %v1888_v57  ;;  %v959_v12 = vsel %vm877_vm12, %v1890_v58, 0.0  ;;  %v799_v11 = vadd.f32 %v735_v6, %v509_v63  ;;  %vm1103_vm14 = vcmp.eq.s32.totalorder %v2112_v16, %v1913_v8 }
  0x89   : > { %v1300_v45 = vpack.c.bf16 %v1252_v0, %v1250_v14  ;;  %v961_v19 = vsel %vm879_vm13, %v1890_v58, 0.0  ;;  %v1023_v2 = vadd.f32 %v959_v12, %v797_v7  ;;  %vm1105_vm15 = vcmp.eq.s32.totalorder %v2115_v18, %v1913_v8 }
  0x8a   : > { %v1185_v9 = vsel %vm1103_vm14, %v1926_v17, 0.0  ;;  %v1025_v21 = vadd.f32 %v961_v19, %v799_v11  ;;  %v1187_v22 = vsel %vm1105_vm15, %v1926_v17, 0.0  ;;  %vm429_vm0 = vcmp.eq.s32.totalorder %v2156_v59, %v1821_v24 }
  0x8b   : > { %1336 = vmatprep.subr.bf16.mxu0 %v1300_v45  ;;  %1427 = vmatprep.subr.bf16.mxu1 %v1300_v45  ;;  %vm656_vm1 = vcmp.eq.s32.totalorder %v2156_v59, %v1827_v26  ;;  %v1249_v16 = vadd.f32 %v1185_v9, %v1023_v2  ;;  %vm431_vm2 = vcmp.eq.s32.totalorder %v365_v20, %v1821_v24  ;;  %v512_v18 = vsel %vm429_vm0, %v1824_v25, 0.0 }
  0x8c   : > { %vm658_vm3 = vcmp.eq.s32.totalorder %v365_v20, %v1827_v26  ;;  %v1251_v23 = vadd.f32 %v1187_v22, %v1025_v21  ;;  %v514_v32 = vsel %vm431_vm2, %v1824_v25, 0.0  ;;  %v738_v33 = vsel %vm656_vm1, %v1830_v27, 0.0 }
  0x8d   : > { %v740_v34 = vsel %vm658_vm3, %v1830_v27, 0.0  ;;  %v802_v35 = vadd.f32 %v738_v33, %v512_v18  ;;  %vm882_vm4 = vcmp.eq.s32.totalorder %v2156_v59, %v1832_v28  ;;  %vm884_vm5 = vcmp.eq.s32.totalorder %v365_v20, %v1832_v28 }
  0x8e   : > { %v804_v36 = vadd.f32 %v740_v34, %v514_v32  ;;  %v1299_v37 = vpack.c.bf16 %v1251_v23, %v1249_v16  ;;  %v964_v38 = vsel %vm882_vm4, %v1834_v29, 0.0  ;;  %v966_v39 = vsel %vm884_vm5, %v1834_v29, 0.0 }
  0x8f   : > { %vm1108_vm6 = vcmp.eq.s32.totalorder %v2156_v59, %v1837_v30  ;;  %v1028_v40 = vadd.f32 %v964_v38, %v802_v35  ;;  %vm1110_vm7 = vcmp.eq.s32.totalorder %v365_v20, %v1837_v30  ;;  %vm428_vm8 = vcmp.eq.s32.totalorder %v2156_v59, %v1877_v52 }
  0x90   : > { %v1030_v41 = vadd.f32 %v966_v39, %v804_v36  ;;  %v1190_v42 = vsel %vm1108_vm6, %v1840_v31, 0.0  ;;  %1337 = vmatpush1.bf16.msra.mxu0 %v1299_v37  ;;  %1428 = vmatpush1.bf16.msra.mxu1 %v1299_v37  ;;  %v1192_v10 = vsel %vm1110_vm7, %v1840_v31, 0.0  ;;  %vm430_vm9 = vcmp.eq.s32.totalorder %v365_v20, %v1877_v52 }
  0x91   : > { %vm655_vm10 = vcmp.eq.s32.totalorder %v2156_v59, %v1883_v54  ;;  %v1254_v44 = vadd.f32 %v1190_v42, %v1028_v40  ;;  %v511_v15 = vsel %vm428_vm8, %v1880_v53, 0.0  ;;  %v513_v46 = vsel %vm430_vm9, %v1880_v53, 0.0 }
  0x92   : > { %v1256_v43 = vadd.f32 %v1192_v10, %v1030_v41  ;;  %vm657_vm11 = vcmp.eq.s32.totalorder %v365_v20, %v1883_v54  ;;  %v737_v47 = vsel %vm655_vm10, %v1886_v55, 0.0  ;;  %vm881_vm12 = vcmp.eq.s32.totalorder %v2156_v59, %v1888_v57 }
  0x93   : > { %vm883_vm13 = vcmp.eq.s32.totalorder %v365_v20, %v1888_v57  ;;  %v739_v49 = vsel %vm657_vm11, %v1886_v55, 0.0  ;;  %v801_v50 = vadd.f32 %v737_v47, %v511_v15  ;;  %v963_v51 = vsel %vm881_vm12, %v1890_v58, 0.0 }
  0x94   : > { %v1302_v48 = vpack.c.bf16 %v1256_v43, %v1254_v44  ;;  %v803_v56 = vadd.f32 %v739_v49, %v513_v46  ;;  %v965_v60 = vsel %vm883_vm13, %v1890_v58, 0.0  ;;  %vm1107_vm14 = vcmp.eq.s32.totalorder %v2156_v59, %v1913_v8 }
  0x95   : > { %vm1109_vm15 = vcmp.eq.s32.totalorder %v365_v20, %v1913_v8  ;;  %v1027_v61 = vadd.f32 %v963_v51, %v801_v50  ;;  %v1189_v13 = vsel %vm1107_vm14, %v1926_v17, 0.0  ;;  %v366_v62 = vadd.s32 144, %v1769_v1 }
  0x96   : > { %1338 = vmatprep.subr.bf16.mxu0 %v1302_v48  ;;  %1429 = vmatprep.subr.bf16.mxu1 %v1302_v48  ;;  %v1191_v14 = vsel %vm1109_vm15, %v1926_v17, 0.0  ;;  %v1029_v63 = vadd.f32 %v965_v60, %v803_v56  ;;  %v367_v0 = vadd.s32 152, %v1769_v1  ;;  %v2292_v4 = vadd.s32 160, %v1769_v1 }
  0x97   : > { %v2295_v6 = vadd.s32 168, %v1769_v1  ;;  %v1253_v59 = vadd.f32 %v1189_v13, %v1027_v61  ;;  %vm433_vm0 = vcmp.eq.s32.totalorder %v366_v62, %v1821_v24  ;;  %vm660_vm1 = vcmp.eq.s32.totalorder %v366_v62, %v1827_v26 }
  0x98   : > { %vm886_vm2 = vcmp.eq.s32.totalorder %v366_v62, %v1832_v28  ;;  %v1255_v7 = vadd.f32 %v1191_v14, %v1029_v63  ;;  %vm435_vm3 = vcmp.eq.s32.totalorder %v367_v0, %v1821_v24  ;;  %v516_v12 = vsel %vm433_vm0, %v1824_v25, 0.0 }
  0x99   : > { %vm662_vm4 = vcmp.eq.s32.totalorder %v367_v0, %v1827_v26  ;;  %v518_v45 = vsel %vm435_vm3, %v1824_v25, 0.0  ;;  %v742_v11 = vsel %vm660_vm1, %v1830_v27, 0.0  ;;  %vm888_vm5 = vcmp.eq.s32.totalorder %v367_v0, %v1832_v28 }
  0x9a   : > { %v744_v19 = vsel %vm662_vm4, %v1830_v27, 0.0  ;;  %v1301_v2 = vpack.c.bf16 %v1255_v7, %v1253_v59  ;;  %v806_v9 = vadd.f32 %v742_v11, %v516_v12  ;;  %v968_v21 = vsel %vm886_vm2, %v1834_v29, 0.0 }
  0x9b   : > { %v808_v20 = vadd.f32 %v744_v19, %v518_v45  ;;  %v970_v22 = vsel %vm888_vm5, %v1834_v29, 0.0  ;;  %vm1112_vm6 = vcmp.eq.s32.totalorder %v366_v62, %v1837_v30  ;;  %vm1114_vm7 = vcmp.eq.s32.totalorder %v367_v0, %v1837_v30 }
  0x9c   : > { %vm432_vm8 = vcmp.eq.s32.totalorder %v366_v62, %v1877_v52  ;;  %1339 = vmatpush1.bf16.msra.mxu0 %v1301_v2  ;;  %1430 = vmatpush1.bf16.msra.mxu1 %v1301_v2  ;;  %v1032_v16 = vadd.f32 %v968_v21, %v806_v9  ;;  %v1194_v23 = vsel %vm1112_vm6, %v1840_v31, 0.0  ;;  %v1196_v32 = vsel %vm1114_vm7, %v1840_v31, 0.0 }
  0x9d   : > { %v1034_v18 = vadd.f32 %v970_v22, %v808_v20  ;;  %vm434_vm9 = vcmp.eq.s32.totalorder %v367_v0, %v1877_v52  ;;  %v515_v33 = vsel %vm432_vm8, %v1880_v53, 0.0  ;;  %vm659_vm10 = vcmp.eq.s32.totalorder %v366_v62, %v1883_v54 }
  0x9e   : > { %vm661_vm11 = vcmp.eq.s32.totalorder %v367_v0, %v1883_v54  ;;  %v1258_v34 = vadd.f32 %v1194_v23, %v1032_v16  ;;  %v517_v36 = vsel %vm434_vm9, %v1880_v53, 0.0  ;;  %v741_v37 = vsel %vm659_vm10, %v1886_v55, 0.0 }
  0x9f   : > { %v1260_v35 = vadd.f32 %v1196_v32, %v1034_v18  ;;  %v743_v38 = vsel %vm661_vm11, %v1886_v55, 0.0  ;;  %v805_v39 = vadd.f32 %v741_v37, %v515_v33  ;;  %vm885_vm12 = vcmp.eq.s32.totalorder %v366_v62, %v1888_v57 }
  0xa0   : > { %vm887_vm13 = vcmp.eq.s32.totalorder %v367_v0, %v1888_v57  ;;  %v807_v41 = vadd.f32 %v743_v38, %v517_v36  ;;  %v967_v42 = vsel %vm885_vm12, %v1890_v58, 0.0  ;;  %vm1111_vm14 = vcmp.eq.s32.totalorder %v366_v62, %v1913_v8 }
  0xa1   : > { %v1304_v40 = vpack.c.bf16 %v1260_v35, %v1258_v34  ;;  %v969_v10 = vsel %vm887_vm13, %v1890_v58, 0.0  ;;  %v1031_v44 = vadd.f32 %v967_v42, %v805_v39  ;;  %vm1113_vm15 = vcmp.eq.s32.totalorder %v367_v0, %v1913_v8 }
  0xa2   : > { %vm437_vm0 = vcmp.eq.s32.totalorder %v2292_v4, %v1821_v24  ;;  %v1033_v43 = vadd.f32 %v969_v10, %v807_v41  ;;  %v1193_v15 = vsel %vm1111_vm14, %v1926_v17, 0.0  ;;  %v1195_v46 = vsel %vm1113_vm15, %v1926_v17, 0.0 }
  0xa3   : > { %1340 = vmatprep.subr.bf16.mxu0 %v1304_v40  ;;  %1431 = vmatprep.subr.bf16.mxu1 %v1304_v40  ;;  %vm439_vm1 = vcmp.eq.s32.totalorder %v2295_v6, %v1821_v24  ;;  %v1257_v47 = vadd.f32 %v1193_v15, %v1031_v44  ;;  %v520_v48 = vsel %vm437_vm0, %v1824_v25, 0.0  ;;  %vm664_vm2 = vcmp.eq.s32.totalorder %v2292_v4, %v1827_v26 }
  0xa4   : > { %v522_v49 = vsel %vm439_vm1, %v1824_v25, 0.0  ;;  %v1259_v50 = vadd.f32 %v1195_v46, %v1033_v43  ;;  %vm666_vm3 = vcmp.eq.s32.totalorder %v2295_v6, %v1827_v26  ;;  %v746_v51 = vsel %vm664_vm2, %v1830_v27, 0.0 }
  0xa5   : > { %vm890_vm4 = vcmp.eq.s32.totalorder %v2292_v4, %v1832_v28  ;;  %v748_v56 = vsel %vm666_vm3, %v1830_v27, 0.0  ;;  %v810_v60 = vadd.f32 %v746_v51, %v520_v48  ;;  %vm892_vm5 = vcmp.eq.s32.totalorder %v2295_v6, %v1832_v28 }
  0xa6   : > { %v972_v61 = vsel %vm890_vm4, %v1834_v29, 0.0  ;;  %v1303_v13 = vpack.c.bf16 %v1259_v50, %v1257_v47  ;;  %v812_v14 = vadd.f32 %v748_v56, %v522_v49  ;;  %v974_v62 = vsel %vm892_vm5, %v1834_v29, 0.0 }
  0xa7   : > { %vm1116_vm6 = vcmp.eq.s32.totalorder %v2292_v4, %v1837_v30  ;;  %v1036_v63 = vadd.f32 %v972_v61, %v810_v60  ;;  %vm1118_vm7 = vcmp.eq.s32.totalorder %v2295_v6, %v1837_v30  ;;  %vm436_vm8 = vcmp.eq.s32.totalorder %v2292_v4, %v1877_v52 }
  0xa8   : > { %v1198_v0 = vsel %vm1116_vm6, %v1840_v31, 0.0  ;;  %1341 = vmatpush1.bf16.msra.mxu0 %v1303_v13  ;;  %1432 = vmatpush1.bf16.msra.mxu1 %v1303_v13  ;;  %v1038_v59 = vadd.f32 %v974_v62, %v812_v14  ;;  %v1200_v7 = vsel %vm1118_vm7, %v1840_v31, 0.0  ;;  %vm438_vm9 = vcmp.eq.s32.totalorder %v2295_v6, %v1877_v52 }
  0xa9   : > { %v519_v12 = vsel %vm436_vm8, %v1880_v53, 0.0  ;;  %v1262_v45 = vadd.f32 %v1198_v0, %v1036_v63  ;;  %v521_v11 = vsel %vm438_vm9, %v1880_v53, 0.0  ;;  %vm663_vm10 = vcmp.eq.s32.totalorder %v2292_v4, %v1883_v54 }
  0xaa   : > { %vm665_vm11 = vcmp.eq.s32.totalorder %v2295_v6, %v1883_v54  ;;  %v1264_v19 = vadd.f32 %v1200_v7, %v1038_v59  ;;  %v745_v2 = vsel %vm663_vm10, %v1886_v55, 0.0  ;;  %vm889_vm12 = vcmp.eq.s32.totalorder %v2292_v4, %v1888_v57 }
  0xab   : > { %v747_v9 = vsel %vm665_vm11, %v1886_v55, 0.0  ;;  %v809_v20 = vadd.f32 %v745_v2, %v519_v12  ;;  %vm891_vm13 = vcmp.eq.s32.totalorder %v2295_v6, %v1888_v57  ;;  %v971_v22 = vsel %vm889_vm12, %v1890_v58, 0.0 }
  0xac   : > { %v811_v21 = vadd.f32 %v747_v9, %v521_v11  ;;  %v1306_v16 = vpack.c.bf16 %v1264_v19, %v1262_v45  ;;  %v973_v18 = vsel %vm891_vm13, %v1890_v58, 0.0  ;;  %vm1115_vm14 = vcmp.eq.s32.totalorder %v2292_v4, %v1913_v8 }
  0xad   : > { %vm1117_vm15 = vcmp.eq.s32.totalorder %v2295_v6, %v1913_v8  ;;  %v1035_v23 = vadd.f32 %v971_v22, %v809_v20  ;;  %v1197_v33 = vsel %vm1115_vm14, %v1926_v17, 0.0  ;;  %v370_v35 = vadd.s32 176, %v1769_v1 }
  0xae   : > { %v1037_v32 = vadd.f32 %v973_v18, %v811_v21  ;;  %v1199_v34 = vsel %vm1117_vm15, %v1926_v17, 0.0  ;;  %1342 = vmatprep.subr.bf16.mxu0 %v1306_v16  ;;  %1433 = vmatprep.subr.bf16.mxu1 %v1306_v16  ;;  %v371_v36 = vadd.s32 184, %v1769_v1  ;;  %v2380_v37 = vadd.s32 192, %v1769_v1 }
  0xaf   : > { %v2383_v4 = vadd.s32 200, %v1769_v1  ;;  %v1261_v38 = vadd.f32 %v1197_v33, %v1035_v23  ;;  %v2386_v39 = vadd.s32 208, %v1769_v1  ;;  %v2389_v40 = vadd.s32 216, %v1769_v1 }
  0xb0   : > { %v1263_v6 = vadd.f32 %v1199_v34, %v1037_v32  ;;  %vm441_vm0 = vcmp.eq.s32.totalorder %v370_v35, %v1821_v24  ;;  %vm443_vm1 = vcmp.eq.s32.totalorder %v371_v36, %v1821_v24  ;;  %vm668_vm2 = vcmp.eq.s32.totalorder %v370_v35, %v1827_v26 }
  0xb1   : > { %vm670_vm3 = vcmp.eq.s32.totalorder %v371_v36, %v1827_v26  ;;  %v524_v42 = vsel %vm441_vm0, %v1824_v25, 0.0  ;;  %v526_v10 = vsel %vm443_vm1, %v1824_v25, 0.0  ;;  %v750_v44 = vsel %vm668_vm2, %v1830_v27, 0.0 }
  0xb2   : > { %v1305_v41 = vpack.c.bf16 %v1263_v6, %v1261_v38  ;;  %v752_v43 = vsel %vm670_vm3, %v1830_v27, 0.0  ;;  %v814_v15 = vadd.f32 %v750_v44, %v524_v42  ;;  %vm894_vm4 = vcmp.eq.s32.totalorder %v370_v35, %v1832_v28 }
  0xb3   : > { %vm896_vm5 = vcmp.eq.s32.totalorder %v371_v36, %v1832_v28  ;;  %v816_v46 = vadd.f32 %v752_v43, %v526_v10  ;;  %v976_v47 = vsel %vm894_vm4, %v1834_v29, 0.0  ;;  %vm1120_vm6 = vcmp.eq.s32.totalorder %v370_v35, %v1837_v30 }
  0xb4   : > { %1343 = vmatpush1.bf16.msra.mxu0 %v1305_v41  ;;  %1434 = vmatpush1.bf16.msra.mxu1 %v1305_v41  ;;  %v978_v48 = vsel %vm896_vm5, %v1834_v29, 0.0  ;;  %v1040_v49 = vadd.f32 %v976_v47, %v814_v15  ;;  %vm1122_vm7 = vcmp.eq.s32.totalorder %v371_v36, %v1837_v30  ;;  %v1202_v50 = vsel %vm1120_vm6, %v1840_v31, 0.0 }
  0xb5   : > { %vm440_vm8 = vcmp.eq.s32.totalorder %v370_v35, %v1877_v52  ;;  %v1042_v51 = vadd.f32 %v978_v48, %v816_v46  ;;  %v1204_v56 = vsel %vm1122_vm7, %v1840_v31, 0.0  ;;  %vm442_vm9 = vcmp.eq.s32.totalorder %v371_v36, %v1877_v52 }
  0xb6   : > { %v523_v60 = vsel %vm440_vm8, %v1880_v53, 0.0  ;;  %v1266_v61 = vadd.f32 %v1202_v50, %v1040_v49  ;;  %v525_v13 = vsel %vm442_vm9, %v1880_v53, 0.0  ;;  %vm667_vm10 = vcmp.eq.s32.totalorder %v370_v35, %v1883_v54 }
  0xb7   : > { %vm669_vm11 = vcmp.eq.s32.totalorder %v371_v36, %v1883_v54  ;;  %v1268_v14 = vadd.f32 %v1204_v56, %v1042_v51  ;;  %v749_v62 = vsel %vm667_vm10, %v1886_v55, 0.0  ;;  %vm893_vm12 = vcmp.eq.s32.totalorder %v370_v35, %v1888_v57 }
  0xb8   : > { %v751_v63 = vsel %vm669_vm11, %v1886_v55, 0.0  ;;  %v813_v0 = vadd.f32 %v749_v62, %v523_v60  ;;  %vm895_vm13 = vcmp.eq.s32.totalorder %v371_v36, %v1888_v57  ;;  %v975_v7 = vsel %vm893_vm12, %v1890_v58, 0.0 }
  0xb9   : > { %v815_v59 = vadd.f32 %v751_v63, %v525_v13  ;;  %v1308_v12 = vpack.c.bf16 %v1268_v14, %v1266_v61  ;;  %v977_v45 = vsel %vm895_vm13, %v1890_v58, 0.0  ;;  %vm1119_vm14 = vcmp.eq.s32.totalorder %v370_v35, %v1913_v8 }
  0xba   : > { %vm1121_vm15 = vcmp.eq.s32.totalorder %v371_v36, %v1913_v8  ;;  %v1039_v11 = vadd.f32 %v975_v7, %v813_v0  ;;  %v1201_v2 = vsel %vm1119_vm14, %v1926_v17, 0.0  ;;  %vm445_vm0 = vcmp.eq.s32.totalorder %v2380_v37, %v1821_v24 }
  0xbb   : > { %v1041_v19 = vadd.f32 %v977_v45, %v815_v59  ;;  %v1203_v9 = vsel %vm1121_vm15, %v1926_v17, 0.0  ;;  %1344 = vmatprep.subr.bf16.mxu0 %v1308_v12  ;;  %1435 = vmatprep.subr.bf16.mxu1 %v1308_v12  ;;  %vm447_vm1 = vcmp.eq.s32.totalorder %v2383_v4, %v1821_v24  ;;  %vm672_vm2 = vcmp.eq.s32.totalorder %v2380_v37, %v1827_v26 }
  0xbc   : > { %v2430_v20 = vadd.s32 224, %v1769_v1  ;;  %v1265_v21 = vadd.f32 %v1201_v2, %v1039_v11  ;;  %v528_v16 = vsel %vm445_vm0, %v1824_v25, 0.0  ;;  %v530_v18 = vsel %vm447_vm1, %v1824_v25, 0.0 }
  0xbd   : > { %v1267_v22 = vadd.f32 %v1203_v9, %v1041_v19  ;;  %vm674_vm3 = vcmp.eq.s32.totalorder %v2383_v4, %v1827_v26  ;;  %v754_v23 = vsel %vm672_vm2, %v1830_v27, 0.0  ;;  %vm898_vm4 = vcmp.eq.s32.totalorder %v2380_v37, %v1832_v28 }
  0xbe   : > { %vm900_vm5 = vcmp.eq.s32.totalorder %v2383_v4, %v1832_v28  ;;  %v756_v33 = vsel %vm674_vm3, %v1830_v27, 0.0  ;;  %v818_v34 = vadd.f32 %v754_v23, %v528_v16  ;;  %v980_v35 = vsel %vm898_vm4, %v1834_v29, 0.0 }
  0xbf   : > { %v1307_v32 = vpack.c.bf16 %v1267_v22, %v1265_v21  ;;  %v820_v36 = vadd.f32 %v756_v33, %v530_v18  ;;  %v982_v38 = vsel %vm900_vm5, %v1834_v29, 0.0  ;;  %vm1124_vm6 = vcmp.eq.s32.totalorder %v2380_v37, %v1837_v30 }
  0xc0   : > { %vm1126_vm7 = vcmp.eq.s32.totalorder %v2383_v4, %v1837_v30  ;;  %v1044_v6 = vadd.f32 %v980_v35, %v818_v34  ;;  %v1206_v41 = vsel %vm1124_vm6, %v1840_v31, 0.0  ;;  %vm444_vm8 = vcmp.eq.s32.totalorder %v2380_v37, %v1877_v52 }
  0xc1   : > { %1345 = vmatpush1.bf16.msra.mxu0 %v1307_v32  ;;  %1436 = vmatpush1.bf16.msra.mxu1 %v1307_v32  ;;  %v1208_v42 = vsel %vm1126_vm7, %v1840_v31, 0.0  ;;  %v1046_v10 = vadd.f32 %v982_v38, %v820_v36  ;;  %vm446_vm9 = vcmp.eq.s32.totalorder %v2383_v4, %v1877_v52  ;;  %v527_v44 = vsel %vm444_vm8, %v1880_v53, 0.0 }
  0xc2   : > { %vm671_vm10 = vcmp.eq.s32.totalorder %v2380_v37, %v1883_v54  ;;  %v1270_v43 = vadd.f32 %v1206_v41, %v1044_v6  ;;  %v529_v15 = vsel %vm446_vm9, %v1880_v53, 0.0  ;;  %vm673_vm11 = vcmp.eq.s32.totalorder %v2383_v4, %v1883_v54 }
  0xc3   : > { %v753_v46 = vsel %vm671_vm10, %v1886_v55, 0.0  ;;  %v1272_v47 = vadd.f32 %v1208_v42, %v1046_v10  ;;  %v755_v48 = vsel %vm673_vm11, %v1886_v55, 0.0  ;;  %vm897_vm12 = vcmp.eq.s32.totalorder %v2380_v37, %v1888_v57 }
  0xc4   : > { %v817_v49 = vadd.f32 %v753_v46, %v527_v44  ;;  %v819_v50 = vadd.f32 %v755_v48, %v529_v15  ;;  %vm899_vm13 = vcmp.eq.s32.totalorder %v2383_v4, %v1888_v57  ;;  %v979_v51 = vsel %vm897_vm12, %v1890_v58, 0.0 }
  0xc5   : > { %vm1123_vm14 = vcmp.eq.s32.totalorder %v2380_v37, %v1913_v8  ;;  %v1310_v56 = vpack.c.bf16 %v1272_v47, %v1270_v43  ;;  %v981_v60 = vsel %vm899_vm13, %v1890_v58, 0.0  ;;  %vm1125_vm15 = vcmp.eq.s32.totalorder %v2383_v4, %v1913_v8 }
  0xc6   : > { %v1043_v61 = vadd.f32 %v979_v51, %v817_v49  ;;  %v1045_v13 = vadd.f32 %v981_v60, %v819_v50  ;;  %v1205_v14 = vsel %vm1123_vm14, %v1926_v17, 0.0  ;;  %v1207_v62 = vsel %vm1125_vm15, %v1926_v17, 0.0 }
  0xc7   : > { %vm449_vm0 = vcmp.eq.s32.totalorder %v2386_v39, %v1821_v24  ;;  %1346 = vmatprep.subr.bf16.mxu0 %v1310_v56  ;;  %1437 = vmatprep.subr.bf16.mxu1 %v1310_v56  ;;  %vm451_vm1 = vcmp.eq.s32.totalorder %v2389_v40, %v1821_v24  ;;  %vm676_vm2 = vcmp.eq.s32.totalorder %v2386_v39, %v1827_v26  ;;  %v377_v43 = vadd.s32 232, %v1769_v1 }
  0xc8   : > { %v1269_v63 = vadd.f32 %v1205_v14, %v1043_v61  ;;  %v532_v37 = vsel %vm449_vm0, %v1824_v25, 0.0  ;;  %v1271_v4 = vadd.f32 %v1207_v62, %v1045_v13  ;;  %v534_v0 = vsel %vm451_vm1, %v1824_v25, 0.0 }
  0xc9   : > { %vm678_vm3 = vcmp.eq.s32.totalorder %v2389_v40, %v1827_v26  ;;  %v758_v59 = vsel %vm676_vm2, %v1830_v27, 0.0  ;;  %vm902_vm4 = vcmp.eq.s32.totalorder %v2386_v39, %v1832_v28  ;;  %vm904_vm5 = vcmp.eq.s32.totalorder %v2389_v40, %v1832_v28 }
  0xca   : > { %v760_v7 = vsel %vm678_vm3, %v1830_v27, 0.0  ;;  %v822_v12 = vadd.f32 %v758_v59, %v532_v37  ;;  %v1309_v45 = vpack.c.bf16 %v1271_v4, %v1269_v63  ;;  %v984_v19 = vsel %vm902_vm4, %v1834_v29, 0.0 }
  0xcb   : > { %v824_v11 = vadd.f32 %v760_v7, %v534_v0  ;;  %v986_v2 = vsel %vm904_vm5, %v1834_v29, 0.0  ;;  %vm1128_vm6 = vcmp.eq.s32.totalorder %v2386_v39, %v1837_v30  ;;  %vm1130_vm7 = vcmp.eq.s32.totalorder %v2389_v40, %v1837_v30 }
  0xcc   : > { %v1048_v9 = vadd.f32 %v984_v19, %v822_v12  ;;  %vm448_vm8 = vcmp.eq.s32.totalorder %v2386_v39, %v1877_v52  ;;  %1347 = vmatpush1.bf16.msra.mxu0 %v1309_v45  ;;  %1438 = vmatpush1.bf16.msra.mxu1 %v1309_v45  ;;  %v1210_v22 = vsel %vm1128_vm6, %v1840_v31, 0.0  ;;  %v1212_v16 = vsel %vm1130_vm7, %v1840_v31, 0.0 }
  0xcd   : > { %v1050_v21 = vadd.f32 %v986_v2, %v824_v11  ;;  %vm450_vm9 = vcmp.eq.s32.totalorder %v2389_v40, %v1877_v52  ;;  %v531_v23 = vsel %vm448_vm8, %v1880_v53, 0.0  ;;  %vm675_vm10 = vcmp.eq.s32.totalorder %v2386_v39, %v1883_v54 }
  0xce   : > { %v1274_v18 = vadd.f32 %v1210_v22, %v1048_v9  ;;  %v533_v32 = vsel %vm450_vm9, %v1880_v53, 0.0  ;;  %vm677_vm11 = vcmp.eq.s32.totalorder %v2389_v40, %v1883_v54  ;;  %v757_v34 = vsel %vm675_vm10, %v1886_v55, 0.0 }
  0xcf   : > { %v1276_v33 = vadd.f32 %v1212_v16, %v1050_v21  ;;  %vm901_vm12 = vcmp.eq.s32.totalorder %v2386_v39, %v1888_v57  ;;  %v759_v35 = vsel %vm677_vm11, %v1886_v55, 0.0  ;;  %v821_v36 = vadd.f32 %v757_v34, %v531_v23 }
  0xd0   : > { %vm903_vm13 = vcmp.eq.s32.totalorder %v2389_v40, %v1888_v57  ;;  %v983_v38 = vsel %vm901_vm12, %v1890_v58, 0.0  ;;  %v823_v41 = vadd.f32 %v759_v35, %v533_v32  ;;  %vm1127_vm14 = vcmp.eq.s32.totalorder %v2386_v39, %v1913_v8 }
  0xd1   : > { %v1312_v6 = vpack.c.bf16 %v1276_v33, %v1274_v18  ;;  %v985_v42 = vsel %vm903_vm13, %v1890_v58, 0.0  ;;  %v1047_v10 = vadd.f32 %v983_v38, %v821_v36  ;;  %vm1129_vm15 = vcmp.eq.s32.totalorder %v2389_v40, %v1913_v8 }
  0xd2   : > { %v1209_v44 = vsel %vm1127_vm14, %v1926_v17, 0.0  ;;  %v1049_v15 = vadd.f32 %v985_v42, %v823_v41  ;;  %v1211_v46 = vsel %vm1129_vm15, %v1926_v17, 0.0  ;;  %vm453_vm0 = vcmp.eq.s32.totalorder %v2430_v20, %v1821_v24 }
  0xd3   : > { %1348 = vmatprep.subr.bf16.mxu0 %v1312_v6  ;;  %1439 = vmatprep.subr.bf16.mxu1 %v1312_v6  ;;  %vm680_vm1 = vcmp.eq.s32.totalorder %v2430_v20, %v1827_v26  ;;  %v1273_v39 = vadd.f32 %v1209_v44, %v1047_v10  ;;  %vm455_vm2 = vcmp.eq.s32.totalorder %v377_v43, %v1821_v24  ;;  %v536_v40 = vsel %vm453_vm0, %v1824_v25, 0.0 }
  0xd4   : > { %vm682_vm3 = vcmp.eq.s32.totalorder %v377_v43, %v1827_v26  ;;  %v1275_v47 = vadd.f32 %v1211_v46, %v1049_v15  ;;  %v538_v48 = vsel %vm455_vm2, %v1824_v25, 0.0  ;;  %v762_v49 = vsel %vm680_vm1, %v1830_v27, 0.0 }
  0xd5   : > { %v764_v50 = vsel %vm682_vm3, %v1830_v27, 0.0  ;;  %v826_v51 = vadd.f32 %v762_v49, %v536_v40  ;;  %vm906_vm4 = vcmp.eq.s32.totalorder %v2430_v20, %v1832_v28  ;;  %vm908_vm5 = vcmp.eq.s32.totalorder %v377_v43, %v1832_v28 }
  0xd6   : > { %v828_v56 = vadd.f32 %v764_v50, %v538_v48  ;;  %v1311_v60 = vpack.c.bf16 %v1275_v47, %v1273_v39  ;;  %v988_v61 = vsel %vm906_vm4, %v1834_v29, 0.0  ;;  %v990_v13 = vsel %vm908_vm5, %v1834_v29, 0.0  ;;  %v336_v47 = vld [vmem:[%s309_s20] sm:$0x77] }
  0xd7   : > { %vm1132_vm6 = vcmp.eq.s32.totalorder %v2430_v20, %v1837_v30  ;;  %v1052_v14 = vadd.f32 %v988_v61, %v826_v51  ;;  %vm1134_vm7 = vcmp.eq.s32.totalorder %v377_v43, %v1837_v30  ;;  %vm452_vm8 = vcmp.eq.s32.totalorder %v2430_v20, %v1877_v52  ;;  %v344_v51 = vld [vmem:[%s313_s24] sm:$0x3] }
  0xd8   : > { %v1054_v62 = vadd.f32 %v990_v13, %v828_v56  ;;  %v1214_v63 = vsel %vm1132_vm6, %v1840_v31, 0.0  ;;  %1349 = vmatpush1.bf16.msra.mxu0 %v1311_v60  ;;  %1440 = vmatpush1.bf16.msra.mxu1 %v1311_v60  ;;  %v1216_v37 = vsel %vm1134_vm7, %v1840_v31, 0.0  ;;  %vm454_vm9 = vcmp.eq.s32.totalorder %v377_v43, %v1877_v52 }
  0xd9   : > { %vm679_vm10 = vcmp.eq.s32.totalorder %v2430_v20, %v1883_v54  ;;  %v1278_v4 = vadd.f32 %v1214_v63, %v1052_v14  ;;  %v535_v59 = vsel %vm452_vm8, %v1880_v53, 0.0  ;;  %v537_v7 = vsel %vm454_vm9, %v1880_v53, 0.0 }
  0xda   : > { %v1280_v0 = vadd.f32 %v1216_v37, %v1054_v62  ;;  %vm681_vm11 = vcmp.eq.s32.totalorder %v377_v43, %v1883_v54  ;;  %v761_v12 = vsel %vm679_vm10, %v1886_v55, 0.0  ;;  %vm905_vm12 = vcmp.eq.s32.totalorder %v2430_v20, %v1888_v57 }
  0xdb   : > { %vm907_vm13 = vcmp.eq.s32.totalorder %v377_v43, %v1888_v57  ;;  %v763_v11 = vsel %vm681_vm11, %v1886_v55, 0.0  ;;  %v825_v19 = vadd.f32 %v761_v12, %v535_v59  ;;  %v987_v2 = vsel %vm905_vm12, %v1890_v58, 0.0 }
  0xdc   : > { %v1314_v45 = vpack.c.bf16 %v1280_v0, %v1278_v4  ;;  %v827_v9 = vadd.f32 %v763_v11, %v537_v7  ;;  %v989_v21 = vsel %vm907_vm13, %v1890_v58, 0.0  ;;  %vm1131_vm14 = vcmp.eq.s32.totalorder %v2430_v20, %v1913_v8 }
  0xdd   : > { %vm1133_vm15 = vcmp.eq.s32.totalorder %v377_v43, %v1913_v8  ;;  %v1051_v22 = vadd.f32 %v987_v2, %v825_v19  ;;  %v1213_v16 = vsel %vm1131_vm14, %v1926_v17, 0.0  ;;  %v378_v23 = vadd.s32 240, %v1769_v1 }
  0xde   : > { %1350 = vmatprep.subr.bf16.mxu0 %v1314_v45  ;;  %1441 = vmatprep.subr.bf16.mxu1 %v1314_v45  ;;  %v1215_v18 = vsel %vm1133_vm15, %v1926_v17, 0.0  ;;  %v1053_v32 = vadd.f32 %v989_v21, %v827_v9  ;;  %v379_v33 = vadd.s32 248, %v1769_v1  ;;  %v337_v34 = vstv %s2541_s15 }
  0xdf   : > { %v339_v35 = vstv %s2543_s16  ;;  %v1277_v36 = vadd.f32 %v1213_v16, %v1051_v22  ;;  %vm457_vm0 = vcmp.eq.s32.totalorder %v378_v23, %v1821_v24  ;;  %vm684_vm1 = vcmp.eq.s32.totalorder %v378_v23, %v1827_v26 }
  0xe0   : > { %vm910_vm2 = vcmp.eq.s32.totalorder %v378_v23, %v1832_v28  ;;  %v1279_v20 = vadd.f32 %v1215_v18, %v1053_v32  ;;  %vm459_vm3 = vcmp.eq.s32.totalorder %v379_v33, %v1821_v24  ;;  %v540_v38 = vsel %vm457_vm0, %v1824_v25, 0.0 }
  0xe1   : > { %vm686_vm4 = vcmp.eq.s32.totalorder %v379_v33, %v1827_v26  ;;  %v542_v6 = vsel %vm459_vm3, %v1824_v25, 0.0  ;;  %v766_v41 = vsel %vm684_vm1, %v1830_v27, 0.0  ;;  %vm912_vm5 = vcmp.eq.s32.totalorder %v379_v33, %v1832_v28 }
  0xe2   : > { %v768_v42 = vsel %vm686_vm4, %v1830_v27, 0.0  ;;  %v1313_v10 = vpack.c.bf16 %v1279_v20, %v1277_v36  ;;  %v830_v44 = vadd.f32 %v766_v41, %v540_v38  ;;  %v992_v15 = vsel %vm910_vm2, %v1834_v29, 0.0 }
  0xe3   : > { %v832_v43 = vadd.f32 %v768_v42, %v542_v6  ;;  %v994_v24 = vsel %vm912_vm5, %v1834_v29, 0.0  ;;  %vm1136_vm6 = vcmp.eq.s32.totalorder %v378_v23, %v1837_v30  ;;  %vm1138_vm7 = vcmp.eq.s32.totalorder %v379_v33, %v1837_v30 }
  0xe4   : > { %vm456_vm8 = vcmp.eq.s32.totalorder %v378_v23, %v1877_v52  ;;  %1351 = vmatpush1.bf16.msra.mxu0 %v1313_v10  ;;  %1442 = vmatpush1.bf16.msra.mxu1 %v1313_v10  ;;  %v1056_v25 = vadd.f32 %v992_v15, %v830_v44  ;;  %v1218_v27 = vsel %vm1136_vm6, %v1840_v31, 0.0  ;;  %v1220_v28 = vsel %vm1138_vm7, %v1840_v31, 0.0 }
  0xe5   : > { %v1058_v26 = vadd.f32 %v994_v24, %v832_v43  ;;  %vm458_vm9 = vcmp.eq.s32.totalorder %v379_v33, %v1877_v52  ;;  %v539_v29 = vsel %vm456_vm8, %v1880_v53, 0.0  ;;  %vm683_vm10 = vcmp.eq.s32.totalorder %v378_v23, %v1883_v54 }
  0xe6   : > { %vm685_vm11 = vcmp.eq.s32.totalorder %v379_v33, %v1883_v54  ;;  %v1282_v30 = vadd.f32 %v1218_v27, %v1056_v25  ;;  %v541_v39 = vsel %vm458_vm9, %v1880_v53, 0.0  ;;  %v765_v40 = vsel %vm683_vm10, %v1886_v55, 0.0 }
  0xe7   : > { %v1284_v46 = vadd.f32 %v1220_v28, %v1058_v26  ;;  %v767_v31 = vsel %vm685_vm11, %v1886_v55, 0.0  ;;  %v829_v52 = vadd.f32 %v765_v40, %v539_v29  ;;  %vm909_vm12 = vcmp.eq.s32.totalorder %v378_v23, %v1888_v57 }
  0xe8   : > { %vm911_vm13 = vcmp.eq.s32.totalorder %v379_v33, %v1888_v57  ;;  %v831_v54 = vadd.f32 %v767_v31, %v541_v39  ;;  %v991_v49 = vsel %vm909_vm12, %v1890_v58, 0.0  ;;  %vm1135_vm14 = vcmp.eq.s32.totalorder %v378_v23, %v1913_v8 }
  0xe9   : > { %v1316_v48 = vpack.c.bf16 %v1284_v46, %v1282_v30  ;;  %v993_v50 = vsel %vm911_vm13, %v1890_v58, 0.0  ;;  %v1055_v56 = vadd.f32 %v991_v49, %v829_v52  ;;  %vm1137_vm15 = vcmp.eq.s32.totalorder %v379_v33, %v1913_v8  ;;  %v1486_v49 = vld [vmem:[%s331_s27] sm:$0x3] }
  0xea   : > { %v338_v53 = vmul.f32 %v337_v34, %v336_v47  ;;  %v1057_v55 = vadd.f32 %v993_v50, %v831_v54  ;;  %v1217_v60 = vsel %vm1135_vm14, %v1926_v17, 0.0  ;;  %v1219_v57 = vsel %vm1137_vm15, %v1926_v17, 0.0 }
  0xeb   : > { %1352 = vmatprep.subr.bf16.mxu0 %v1316_v48  ;;  %1443 = vmatprep.subr.bf16.mxu1 %v1316_v48  ;;  %v1281_v61 = vadd.f32 %v1217_v60, %v1055_v56  ;;  %v1404_v14 = vrot.slane %v344_v51, %v1778_v3  ;;  %v1408_v58 = vrot.slane %v344_v51, %v1782_v5  ;;  %v1701_v32 = vmov 1966171168   ;;  %v1397_v60 = vld [vmem:[%s327_s30] sm:$0x3] }
  0xec   : > { %v340_v13 = vadd.f32 %v339_v35, %v338_v53  ;;  %v1283_v62 = vadd.f32 %v1219_v57, %v1057_v55  ;;  %v1377_v33 = vunpack.c.l.s4 %v1701_v32  ;;  %vm1390_vm0 = vcmask 1040384  }
  0xed   : > { %v1412_v37 = vpack.c.bf16 %v1408_v58, %v1408_v58  ;;  %v1411_v8 = vpack.c.bf16 %v1404_v14, %v1404_v14  ;;  %vm1481_vm1 = vsmask.f32 0  ;;  %vm1393_vm2 = vcmask 1041409  }
  0xee   : > { %v341_v63 = vmax.f32 %v340_v13, 0.0  ;;  %v1315_v4 = vpack.c.bf16 %v1283_v62, %v1281_v61  ;;  %v1378_v43 = vunpack.c.0.s8 %v1377_v33  ;;  %vm1483_vm3 = vsmask.f32 1024  ;;  %vm2619_vm4 = vmand %vm1390_vm0, %vm1481_vm1 }
  0xef   : > { %1445 = vmatprep.mubr.bf16.mxu1 %v1412_v37  ;;  %vm1484_vm5 = vmand %vm1393_vm2, %vm1483_vm3  ;;  %vm1391_vm6 = vsmask.f32 512  ;;  %vm1394_vm7 = vsmask.f32 1536 }
  0xf0   : > { %v342_v0 = vmin.f32 %v341_v63, 255.0  ;;  %1353 = vmatpush1.bf16.msra.mxu0 %v1315_v4  ;;  %1444 = vmatpush1.bf16.msra.mxu1 %v1315_v4  ;;  %v1381_v46 = vsub.s32 %v1378_v43, %v1769_v1  ;;  %vm1485_vm8 = vmor %vm1484_vm5, %vm2619_vm4 }
  0xf1   : > { %vm1392_vm9 = vmand %vm1390_vm0, %vm1391_vm6 }
  0xf2   : > { %v343_v59 = vfloor.f32 %v342_v0  ;;  %vm1395_vm10 = vmand %vm1393_vm2, %vm1394_vm7 }
  0xf3   : > { %1446 = vmatmul.mubr.bf16.vlgmr.msra.gmra.mrb[0].mxu1 %v1411_v8  ;;  %vm1396_vm11 = vmor %vm1395_vm10, %vm1392_vm9 }
  0xf4   : > { %v1318_v7 = vcombine.high %v343_v59, %v343_v59  ;;  %v1320_v12 = vpack.c.bf16 %v343_v59, %v343_v59 }
  0xf6   : > { %v1321_v17 = vpack.c.bf16 %v1318_v7, %v1318_v7 }
  0xf8   : > { %1354 = vmatprep.mubr.bf16.mxu0 %v1321_v17 }
  0xf9   : > { %1355 = vmatmul.mubr.bf16.vlgmr.msra.gmra.mrb[0].mxu0 %v1320_v12 }
 0x1c6   : > { %v1447_v45 = vpop.f32.mrb[0].mxu1 }
 0x1c7   : > { %v1448_v3 = vadd.f32 0.5, %v1447_v45  ;;  %v1449_v11 = vpop.f32.mrb[1].mxu1 }
 0x1c8   : > { %v1450_v5 = vadd.f32 0.5, %v1449_v11  ;;  %v1451_v19 = vpop.f32.mrb[2].mxu1 }
 0x1c9   : > { %v1454_v2 = vfloor.f32 %v1448_v3  ;;  %v1452_v9 = vpop.f32.mrb[3].mxu1 }
 0x1ca   : > { %v1455_v21 = vfloor.f32 %v1450_v5 }
 0x1cb   : > { %v1456_v16 = vmax.f32 %v1454_v2, 0.0 }
 0x1cc   : > { %v1356_v22 = vpop.f32.mrb[0].mxu0  ;;  %v1457_v34 = vmax.f32 %v1455_v21, 0.0 }
 0x1cd   : > { %v1357_v18 = vadd.f32 0.5, %v1356_v22  ;;  %v1358_v23 = vpop.f32.mrb[1].mxu0  ;;  %v1458_v35 = vmin.f32 %v1456_v16, 255.0 }
 0x1ce   : > { %v1359_v36 = vadd.f32 0.5, %v1358_v23  ;;  %v1360_v20 = vpop.f32.mrb[2].mxu0  ;;  %v1459_v6 = vmin.f32 %v1457_v34, 255.0 }
 0x1cf   : > { %v1363_v38 = vfloor.f32 %v1357_v18  ;;  %v1361_v41 = vpop.f32.mrb[3].mxu0  ;;  %v1649_v42 = vtrunc.f32 %v1458_v35 }
 0x1d0   : > { %v1364_v10 = vfloor.f32 %v1359_v36  ;;  %v1651_v15 = vtrunc.f32 %v1459_v6 }
 0x1d1   : > { %v1365_v44 = vmax.f32 %v1363_v38, 0.0  ;;  %v1650_v24 = vcvt.f32.s32 %v1649_v42 }
 0x1d2   : > { %v1366_v25 = vmax.f32 %v1364_v10, 0.0  ;;  %v1652_v27 = vcvt.f32.s32 %v1651_v15 }
 0x1d3   : > { %v1367_v26 = vmin.f32 %v1365_v44, 255.0  ;;  %v1462_v28 = vpack.c.b16 %v1650_v24, %v1650_v24 }
 0x1d4   : > { %v1368_v29 = vmin.f32 %v1366_v25, 255.0  ;;  %v1464_v39 = vpack.c.b16 %v1652_v27, %v1652_v27 }
 0x1d5   : > { %v1645_v30 = vtrunc.f32 %v1367_v26 }
 0x1d6   : > { %v1647_v40 = vtrunc.f32 %v1368_v29  ;;  %v1639_v52 = vpack.c.b8 %v1464_v39, %v1462_v28 }
 0x1d7   : > { %v1646_v31 = vcvt.f32.s32 %v1645_v30 }
 0x1d8   : > { %v1648_v48 = vcvt.f32.s32 %v1647_v40  ;;  %v1473_v1 = vrot.slane %v1639_v52, %v1381_v46 }
 0x1d9   : > { %v1371_v54 = vpack.c.b16 %v1646_v31, %v1646_v31 }
 0x1da   : > { %v1373_v50 = vpack.c.b16 %v1648_v48, %v1648_v48  ;;  %v1480_v51 = vrot.slane %v1473_v1, %v1381_v46 }
 0x1dc   : > { %v1638_v56 = vpack.c.b8 %v1373_v50, %v1371_v54  ;;  %v1487_v53 = vsel %vm1485_vm8, %v1480_v51, %v1486_v49 }
 0x1dd   : > { %1488 = vst [vmem:[%s331_s27] sm:$0x3] %v1487_v53 }
 0x1de   : > { %v1382_v55 = vrot.slane %v1638_v56, %v1381_v46 }
 0x1e0   : > { %v1389_v57 = vrot.slane %v1382_v55, %v1381_v46 }
 0x1e2   : > { %v1398_v61 = vsel %vm1396_vm11, %v1389_v57, %v1397_v60 }
 0x1e3   : > { %1399 = vst [vmem:[%s327_s30] sm:$0x3] %v1398_v61 }
 0x1e4 PF: > { %s18_s21 = sadd.s32 1, %s1698_s21  }
 0x1e5   : > { %p15_p1 = scmp.ge.s32.totalorder %s18_s21, 6  }
 0x1e7   :  { %17 = sbr.rel (!%p15_p1) target bundleno = 1 (0x1), region = 96 }
 0x1ee   :  { %1522 = vsyncpa [#allocation3], 1 }
 0x1ef   :  { %1524 = vsyncpa [#allocation3 + $0x1], 1 }

</bundles_post_ra>
